<compile_context>
chip_gen: v7x
topology: tpu7x:2x2x1
jax: 0.10.0
libtpu: 0.0.40
codegen_flags: <defaults>
</compile_context>

<pallas_src>
import functools

import numpy as np
import jax
import jax.numpy as jnp
from jax.experimental import pallas as pl
from jax.experimental.pallas import tpu as pltpu

_TR = 128      # query-row tile (multiple of 8 sublanes)
_LANES = 128   # lane-dense output width


def _supcon_kernel(emb_ref, lm_col_ref, lm_row_ref, cvalid_ref, rvalid_ref,
                   out_ref, *, inv_tem, use_bf16):
    i = pl.program_id(0)
    tr = lm_col_ref.shape[0]
    n_pad, _ = emb_ref.shape

    # L2 normalize (F.normalize semantics: x / max(||x||_2, eps)).
    k_raw = emb_ref[...]                                             # (N_pad, D_pad) f32
    k_nrm = jnp.sqrt(jnp.sum(k_raw * k_raw, axis=1, keepdims=True))
    k = k_raw / jnp.maximum(k_nrm, 1e-12)

    row0 = pl.multiple_of(i * tr, tr)
    q_raw = emb_ref[pl.ds(row0, tr), :]                              # (TR, D_pad)
    q_nrm = jnp.sqrt(jnp.sum(q_raw * q_raw, axis=1, keepdims=True))
    q = q_raw / jnp.maximum(q_nrm, 1e-12)

    if use_bf16:   # bf16 MXU inputs, f32 accumulation
        q_mm = q.astype(jnp.bfloat16)
        k_mm = k.astype(jnp.bfloat16)
    else:
        q_mm, k_mm = q, k

    sim = jax.lax.dot_general(
        q_mm, k_mm, (((1,), (1,)), ((), ())),
        preferred_element_type=jnp.float32) * inv_tem                # (TR, N_pad) f32

    # Diagonal exclusion + padded-column exclusion (2-D iota; 1-D iota is not
    # supported on TPU).
    row_ids = jax.lax.broadcasted_iota(jnp.int32, (tr, n_pad), 0) + i * tr
    col_ids = jax.lax.broadcasted_iota(jnp.int32, (tr, n_pad), 1)
    col_valid = cvalid_ref[...]                                      # (1, N_pad) f32
    logits_mask = (row_ids != col_ids).astype(jnp.float32) * col_valid

    # Positive-pair mask from labels_mask equality, diagonal removed.
    pos_mask = (lm_col_ref[...] == lm_row_ref[...]).astype(jnp.float32) * logits_mask

    # Row-max-stabilized masked log-softmax (matches the torch code; the max
    # cancels analytically so padded zero-columns cannot perturb the value).
    row_max = jnp.max(sim, axis=1, keepdims=True)
    logits = sim - row_max
    exp_logits = jnp.exp(logits) * logits_mask
    log_prob = logits - jnp.log(jnp.sum(exp_logits, axis=1, keepdims=True))

    mask_sum = jnp.sum(pos_mask, axis=1, keepdims=True)
    safe_sum = jnp.where(mask_sum == 0.0, 1.0, mask_sum)
    mean_log_prob_pos = -jnp.sum(pos_mask * log_prob, axis=1, keepdims=True) / safe_sum
    mean_log_prob_pos = mean_log_prob_pos * rvalid_ref[...]          # zero padded rows

    # Lane-dense store: broadcast the (TR, 1) per-row loss across 128 lanes.
    out_ref[...] = jnp.broadcast_to(mean_log_prob_pos, out_ref.shape).astype(out_ref.dtype)


def supcon_loss_plms(batch_emb, labels, label_num, label_vocab,
                     temperature=0.05, use_bf16_matmul=True):
    """Pallas port of SupConLossPLMS.forward."""
    o_index = label_vocab.index('O')

    # Host-side, data-dependent entity selection (mirrors the module's CPU
    # np.argwhere).
    # TODO(synk): under jit this would need a fixed-capacity mask formulation
    # instead of a dynamic-shape gather / early return.
    labels_np = np.asarray(labels)
    ent = np.argwhere(labels_np != o_index).reshape(-1)
    if ent.size <= 1:
        return jnp.asarray(1.0, jnp.float32)   # matches `return torch.tensor(1)`

    emb_np = np.asarray(batch_emb, np.float32)[ent]
    lab_np = labels_np[ent].astype(np.int32)
    n, d = emb_np.shape

    index_mask = np.arange(label_num, label_num + n, dtype=np.int32)
    labels_mask = np.where(lab_np > 0, lab_np, index_mask).astype(np.int32)

    n_pad = ((n + _TR - 1) // _TR) * _TR          # multiple of 128 -> lane-dense sim
    d_pad = ((d + 127) // 128) * 128

    emb_p = np.zeros((n_pad, d_pad), np.float32)
    emb_p[:n, :d] = emb_np
    lm_p = np.full((n_pad,), -1, np.int32)
    lm_p[:n] = labels_mask
    valid = (np.arange(n_pad) < n).astype(np.float32)

    emb_dev = jnp.asarray(emb_p)
    lm_col = jnp.asarray(lm_p.reshape(n_pad, 1))
    lm_row = jnp.asarray(lm_p.reshape(1, n_pad))
    col_valid = jnp.asarray(valid.reshape(1, n_pad))
    row_valid = jnp.asarray(valid.reshape(n_pad, 1))

    kernel = functools.partial(_supcon_kernel,
                               inv_tem=1.0 / float(temperature),
                               use_bf16=bool(use_bf16_matmul))

    # Explicit scoped-VMEM budget: generous estimate, capped below v7x's
    # 64 MiB physical VMEM (v5e/v6e have 128 MiB).
    vmem_est = (3 * n_pad * d_pad * 4            # resident key block + normalized copy
                + 16 * _TR * n_pad * 4           # sim / mask / exp temporaries
                + 4 * _TR * _LANES * 4)
    vmem_limit = int(min(max(vmem_est, 16 * 1024 * 1024), 48 * 1024 * 1024))

    per_row = pl.pallas_call(
        kernel,
        out_shape=jax.ShapeDtypeStruct((n_pad, _LANES), jnp.float32),
        grid_spec=pltpu.PrefetchScalarGridSpec(
            num_scalar_prefetch=0,
            grid=(n_pad // _TR,),
            in_specs=[
                pl.BlockSpec((n_pad, d_pad), lambda i: (0, 0)),   # keys: VMEM-resident
                pl.BlockSpec((_TR, 1), lambda i: (i, 0)),          # labels_mask column tile
                pl.BlockSpec((1, n_pad), lambda i: (0, 0)),        # labels_mask row (resident)
                pl.BlockSpec((1, n_pad), lambda i: (0, 0)),        # column validity (resident)
                pl.BlockSpec((_TR, 1), lambda i: (i, 0)),          # row validity tile
            ],
            out_specs=pl.BlockSpec((_TR, _LANES), lambda i: (i, 0)),
        ),
        compiler_params=pltpu.CompilerParams(
            dimension_semantics=("parallel",),   # independent query tiles -> v7x megacore
            vmem_limit_bytes=vmem_limit,
        ),
    )(emb_dev, lm_col, lm_row, col_valid, row_valid)

    # Padded rows were zeroed in-kernel; final scalar mean over the n entities.
    return jnp.sum(per_row[:, 0]) / float(n)


def _reference_supcon(batch_emb, labels, label_num, label_vocab, temperature):
    """Pure-numpy transcription of the PyTorch SupConLossPLMS.forward."""
    o_index = label_vocab.index('O')
    ent = np.argwhere(labels != o_index).reshape(-1)
    if ent.size <= 1:
        return 1.0
    lab = labels[ent].reshape(-1, 1).astype(np.int64)
    emb = batch_emb[ent].astype(np.float64)
    n = emb.shape[0]
    index_mask = np.arange(label_num, n + label_num).reshape(-1, 1)
    labels_mask = np.where(lab > 0, lab, index_mask)
    mask = (labels_mask == labels_mask.T).astype(np.float64)
    nrm = np.linalg.norm(emb, axis=1, keepdims=True)
    norm_emb = emb / np.maximum(nrm, 1e-12)
    dot = (norm_emb @ norm_emb.T) / temperature
    logits = dot - dot.max(axis=1, keepdims=True)
    logits_mask = np.ones_like(mask)
    np.fill_diagonal(logits_mask, 0.0)
    mask = mask * logits_mask
    exp_logits = np.exp(logits) * logits_mask
    log_prob = logits - np.log(exp_logits.sum(axis=1, keepdims=True))
    mask_sum = mask.sum(axis=1)
    mask_sum = np.where(mask_sum == 0, 1.0, mask_sum)
    mean_log_prob_pos = -(mask * log_prob).sum(axis=1) / mask_sum
    return float(mean_log_prob_pos.mean())


if __name__ == "__main__":
    label_vocab = ['O', 'B-PER', 'I-PER', 'B-LOC', 'I-LOC']
    label_num = len(label_vocab)
    seq, hidden = 24, 32
    temperature = 0.05

    key = jax.random.PRNGKey(0)
    k_emb, k_lab = jax.random.split(key)
    batch_emb = jax.random.normal(k_emb, (seq, hidden), dtype=jnp.float32)
    labels = jax.random.randint(k_lab, (seq,), 0, label_num, dtype=jnp.int32)
    # Guarantee >=2 entities and at least one genuine positive pair.
    labels = labels.at[0].set(1).at[1].set(1).at[2].set(2)

    # Exact fp32 path (tight check against the module's semantics).
    loss_f32 = supcon_loss_plms(batch_emb, labels, label_num, label_vocab,
                                temperature, use_bf16_matmul=False)
    loss_f32 = jax.block_until_ready(loss_f32)

    # bf16 MXU inputs with f32 accumulation (fast path; looser tolerance).
    loss_bf16 = supcon_loss_plms(batch_emb, labels, label_num, label_vocab,
                                 temperature, use_bf16_matmul=True)
    loss_bf16 = jax.block_until_ready(loss_bf16)

    ref = _reference_supcon(np.asarray(batch_emb), np.asarray(labels),
                            label_num, label_vocab, temperature)

    assert np.isfinite(float(loss_f32)), float(loss_f32)
    assert np.allclose(float(loss_f32), ref, atol=1e-3, rtol=1e-3), (float(loss_f32), ref)
    assert np.allclose(float(loss_bf16), ref, atol=1e-1, rtol=3e-2), (float(loss_bf16), ref)

    print("KERNEL_OK")
</pallas_src>

<mosaic_0001>
module attributes {stable_mosaic.version = 11 : i64} {
  func.func @_supcon_kernel(%arg0: i32, %arg1: memref<128x128xf32, #tpu.memory_space<vmem>>, %arg2: memref<128x1xi32, #tpu.memory_space<vmem>>, %arg3: memref<1x128xi32, #tpu.memory_space<vmem>>, %arg4: memref<1x128xf32, #tpu.memory_space<vmem>>, %arg5: memref<128x1xf32, #tpu.memory_space<vmem>>, %arg6: memref<128x128xf32, #tpu.memory_space<vmem>>) attributes {dimension_semantics = [#tpu.dimension_semantics<parallel>], iteration_bounds = array<i64: 1>, scalar_prefetch = 0 : i64, scratch_operands = 0 : i64, tpu.core_type = #tpu.core_type<tc>, window_params = [{pipeline_mode = #tpu.pipeline_mode<synchronous>, transform_indices = @transform_0, window_bounds = array<i64: 128, 128>}, {transform_indices = @transform_1, window_bounds = array<i64: 128, 1>}, {pipeline_mode = #tpu.pipeline_mode<synchronous>, transform_indices = @transform_2, window_bounds = array<i64: 1, 128>}, {pipeline_mode = #tpu.pipeline_mode<synchronous>, transform_indices = @transform_3, window_bounds = array<i64: 1, 128>}, {transform_indices = @transform_4, window_bounds = array<i64: 128, 1>}, {transform_indices = @transform_5, window_bounds = array<i64: 128, 128>}]} {
    %c0 = arith.constant 0 : index
    %c0_0 = arith.constant 0 : index
    %0 = vector.load %arg1[%c0, %c0_0] : memref<128x128xf32, #tpu.memory_space<vmem>>, vector<128x128xf32>
    %1 = arith.mulf %0, %0 : vector<128x128xf32>
    %cst = arith.constant dense<0.000000e+00> : vector<128xf32>
    %2 = vector.multi_reduction <add>, %1, %cst [1] : vector<128x128xf32> to vector<128xf32>
    %3 = vector.shape_cast %2 : vector<128xf32> to vector<128x1xf32>
    %4 = math.sqrt %3 : vector<128x1xf32>
    %cst_1 = arith.constant 9.99999996E-13 : f32
    %5 = vector.broadcast %cst_1 : f32 to vector<128x1xf32>
    %6 = arith.maximumf %4, %5 : vector<128x1xf32>
    %7 = vector.broadcast %6 : vector<128x1xf32> to vector<128x128xf32>
    %8 = arith.divf %0, %7 : vector<128x128xf32>
    %c128_i32 = arith.constant 128 : i32
    %9 = arith.muli %arg0, %c128_i32 : i32
    %10 = tpu.assume_multiple %9, 128 : i32
    %11 = arith.index_cast %10 : i32 to index
    %c0_2 = arith.constant 0 : index
    %12 = vector.load %arg1[%11, %c0_2] : memref<128x128xf32, #tpu.memory_space<vmem>>, vector<128x128xf32>
    %13 = arith.mulf %12, %12 : vector<128x128xf32>
    %cst_3 = arith.constant dense<0.000000e+00> : vector<128xf32>
    %14 = vector.multi_reduction <add>, %13, %cst_3 [1] : vector<128x128xf32> to vector<128xf32>
    %15 = vector.shape_cast %14 : vector<128xf32> to vector<128x1xf32>
    %16 = math.sqrt %15 : vector<128x1xf32>
    %cst_4 = arith.constant 9.99999996E-13 : f32
    %17 = vector.broadcast %cst_4 : f32 to vector<128x1xf32>
    %18 = arith.maximumf %16, %17 : vector<128x1xf32>
    %19 = vector.broadcast %18 : vector<128x1xf32> to vector<128x128xf32>
    %20 = arith.divf %12, %19 : vector<128x128xf32>
    %cst_5 = arith.constant dense<0.000000e+00> : vector<128x128xf32>
    %21 = tpu.matmul %20, %8, %cst_5 {dimension_numbers = #tpu.dot_dimension_numbers<[1], [1], [0], [0], [0, 0, 1, 0], [], []>} : vector<128x128xf32>, vector<128x128xf32>, vector<128x128xf32> -> vector<128x128xf32>
    %cst_6 = arith.constant 2.000000e+01 : f32
    %22 = vector.broadcast %cst_6 : f32 to vector<128x128xf32>
    %23 = arith.mulf %21, %22 : vector<128x128xf32>
    %24 = tpu.iota {dimensions = array<i32: 0>} : vector<128x128xi32>
    %c128_i32_7 = arith.constant 128 : i32
    %25 = arith.muli %arg0, %c128_i32_7 : i32
    %26 = vector.broadcast %25 : i32 to vector<128x128xi32>
    %27 = arith.addi %24, %26 : vector<128x128xi32>
    %28 = tpu.iota {dimensions = array<i32: 1>} : vector<128x128xi32>
    %c0_8 = arith.constant 0 : index
    %c0_9 = arith.constant 0 : index
    %29 = vector.load %arg4[%c0_8, %c0_9] : memref<1x128xf32, #tpu.memory_space<vmem>>, vector<1x128xf32>
    %30 = arith.cmpi ne, %27, %28 : vector<128x128xi32>
    %31 = arith.extui %30 : vector<128x128xi1> to vector<128x128xi32>
    %32 = arith.sitofp %31 : vector<128x128xi32> to vector<128x128xf32>
    %33 = vector.broadcast %29 : vector<1x128xf32> to vector<128x128xf32>
    %34 = arith.mulf %32, %33 : vector<128x128xf32>
    %c0_10 = arith.constant 0 : index
    %c0_11 = arith.constant 0 : index
    %35 = vector.load %arg2[%c0_10, %c0_11] : memref<128x1xi32, #tpu.memory_space<vmem>>, vector<128x1xi32>
    %c0_12 = arith.constant 0 : index
    %c0_13 = arith.constant 0 : index
    %36 = vector.load %arg3[%c0_12, %c0_13] : memref<1x128xi32, #tpu.memory_space<vmem>>, vector<1x128xi32>
    %37 = vector.broadcast %35 : vector<128x1xi32> to vector<128x128xi32>
    %38 = vector.broadcast %36 : vector<1x128xi32> to vector<128x128xi32>
    %39 = arith.cmpi eq, %37, %38 : vector<128x128xi32>
    %40 = arith.extui %39 : vector<128x128xi1> to vector<128x128xi32>
    %41 = arith.sitofp %40 : vector<128x128xi32> to vector<128x128xf32>
    %42 = arith.mulf %41, %34 : vector<128x128xf32>
    %cst_14 = arith.constant dense<0xFF800000> : vector<128xf32>
    %43 = vector.multi_reduction <maximumf>, %23, %cst_14 [1] : vector<128x128xf32> to vector<128xf32>
    %44 = vector.shape_cast %43 : vector<128xf32> to vector<128x1xf32>
    %45 = vector.broadcast %44 : vector<128x1xf32> to vector<128x128xf32>
    %46 = arith.subf %23, %45 : vector<128x128xf32>
    %47 = math.exp %46 : vector<128x128xf32>
    %48 = arith.mulf %47, %34 : vector<128x128xf32>
    %cst_15 = arith.constant dense<0.000000e+00> : vector<128xf32>
    %49 = vector.multi_reduction <add>, %48, %cst_15 [1] : vector<128x128xf32> to vector<128xf32>
    %50 = vector.shape_cast %49 : vector<128xf32> to vector<128x1xf32>
    %51 = math.log %50 : vector<128x1xf32>
    %52 = vector.broadcast %51 : vector<128x1xf32> to vector<128x128xf32>
    %53 = arith.subf %46, %52 : vector<128x128xf32>
    %cst_16 = arith.constant dense<0.000000e+00> : vector<128xf32>
    %54 = vector.multi_reduction <add>, %42, %cst_16 [1] : vector<128x128xf32> to vector<128xf32>
    %55 = vector.shape_cast %54 : vector<128xf32> to vector<128x1xf32>
    %cst_17 = arith.constant 0.000000e+00 : f32
    %56 = vector.broadcast %cst_17 : f32 to vector<128x1xf32>
    %57 = arith.cmpf oeq, %55, %56 : vector<128x1xf32>
    %cst_18 = arith.constant 1.000000e+00 : f32
    %58 = vector.broadcast %cst_18 : f32 to vector<128x1xf32>
    %59 = arith.select %57, %58, %55 : vector<128x1xi1>, vector<128x1xf32>
    %60 = arith.mulf %42, %53 : vector<128x128xf32>
    %cst_19 = arith.constant dense<0.000000e+00> : vector<128xf32>
    %61 = vector.multi_reduction <add>, %60, %cst_19 [1] : vector<128x128xf32> to vector<128xf32>
    %62 = vector.shape_cast %61 : vector<128xf32> to vector<128x1xf32>
    %cst_20 = arith.constant 0.000000e+00 : f32
    %63 = vector.broadcast %cst_20 : f32 to vector<128x1xf32>
    %64 = arith.subf %63, %62 : vector<128x1xf32>
    %65 = arith.divf %64, %59 : vector<128x1xf32>
    %c0_21 = arith.constant 0 : index
    %c0_22 = arith.constant 0 : index
    %66 = vector.load %arg5[%c0_21, %c0_22] : memref<128x1xf32, #tpu.memory_space<vmem>>, vector<128x1xf32>
    %67 = arith.mulf %65, %66 : vector<128x1xf32>
    %68 = vector.shape_cast %67 : vector<128x1xf32> to vector<128x1xf32>
    %69 = vector.broadcast %68 : vector<128x1xf32> to vector<128x128xf32>
    %c0_23 = arith.constant 0 : index
    %c0_24 = arith.constant 0 : index
    %70 = vector.load %arg6[%c0_23, %c0_24] : memref<128x128xf32, #tpu.memory_space<vmem>>, vector<128x128xf32>
    tpu.vector_store %arg6[%c0_23, %c0_24], %69 {strides = array<i32>} : memref<128x128xf32, #tpu.memory_space<vmem>>, vector<128x128xf32>,
    return
  }
  func.func @transform_0(%arg0: i32) -> (i32, i32) {
    %c0_i32 = arith.constant 0 : i32
    %c0_i32_0 = arith.constant 0 : i32
    %c0_i32_1 = arith.constant 0 : i32
    return %c0_i32, %c0_i32_0 : i32, i32
  }
  func.func @transform_1(%arg0: i32) -> (i32, i32) {
    %c0_i32 = arith.constant 0 : i32
    %c0_i32_0 = arith.constant 0 : i32
    return %arg0, %c0_i32 : i32, i32
  }
  func.func @transform_2(%arg0: i32) -> (i32, i32) {
    %c0_i32 = arith.constant 0 : i32
    %c0_i32_0 = arith.constant 0 : i32
    %c0_i32_1 = arith.constant 0 : i32
    return %c0_i32, %c0_i32_0 : i32, i32
  }
  func.func @transform_3(%arg0: i32) -> (i32, i32) {
    %c0_i32 = arith.constant 0 : i32
    %c0_i32_0 = arith.constant 0 : i32
    %c0_i32_1 = arith.constant 0 : i32
    return %c0_i32, %c0_i32_0 : i32, i32
  }
  func.func @transform_4(%arg0: i32) -> (i32, i32) {
    %c0_i32 = arith.constant 0 : i32
    %c0_i32_0 = arith.constant 0 : i32
    return %arg0, %c0_i32 : i32, i32
  }
  func.func @transform_5(%arg0: i32) -> (i32, i32) {
    %c0_i32 = arith.constant 0 : i32
    %c0_i32_0 = arith.constant 0 : i32
    return %arg0, %c0_i32 : i32, i32
  }
}

</mosaic_0001>

<bundles_post_ra>
// kernel: tpu_custom_call.1
= control target key start
LH: loop header
LB: loop body
LE: loop exit
PB: predicated region body
PF: predicated region fallthrough
CT: control target
= control target key end

     0   :  { %s2862_s0 = inlined_call_operand.vmem [shape: f32[128,128], index: 0, kind: input, shape index: {}]   ;;  %s2863_s1 = inlined_call_operand.vmem [shape: s32[128,1], index: 1, kind: input, shape index: {}]   ;;  %s2864_s2 = inlined_call_operand.vmem [shape: s32[1,128], index: 2, kind: input, shape index: {}]   ;;  %s2865_s3 = inlined_call_operand.vmem [shape: f32[1,128], index: 3, kind: input, shape index: {}]   ;;  %s2866_s4 = inlined_call_operand.vmem [shape: f32[128,1], index: 4, kind: input, shape index: {}]   ;;  %s2867_s5 = inlined_call_operand.hbm [shape: f32[128,128], index: 5, kind: output, shape index: {}]  }
   0x1   :  { %v1825_v0 = vld [vmem:[%s2862_s0 + $0x10] sm:$0xff]  ;;  %v1830_v1 = vld [vmem:[%s2862_s0] sm:$0xff]  ;;  %v1835_v2 = vld [vmem:[%s2862_s0 + $0x18] sm:$0xff] }
   0x2   :  { %v39_v3 = vmul.f32 %v1825_v0, %v1825_v0  ;;  %v37_v4 = vmul.f32 %v1830_v1, %v1830_v1  ;;  %v1844_v5 = vld [vmem:[%s2862_s0 + $0x8] sm:$0xff]  ;;  %v40_v6 = vmul.f32 %v1835_v2, %v1835_v2  ;;  %v1858_v9 = vld [vmem:[%s2862_s0 + $0x20] sm:$0xff] }
   0x3   :  { %v38_v7 = vmul.f32 %v1844_v5, %v1844_v5  ;;  %v1853_v8 = vld [vmem:[%s2862_s0 + $0x28] sm:$0xff] }
   0x4   :  { %57 = vadd.xlane.f32.xlu1 %v39_v3  ;;  %53 = vadd.xlane.f32.xlu0 %v37_v4 }
   0x5   :  { %10 = vsyncpa [#allocation3], 0  ;;  %v42_v10 = vmul.f32 %v1853_v8, %v1853_v8  ;;  %v41_v11 = vmul.f32 %v1858_v9, %v1858_v9  ;;  %v1867_v12 = vld [vmem:[%s2862_s0 + $0x38] sm:$0xff]  ;;  %v1872_v13 = vld [vmem:[%s2862_s0 + $0x30] sm:$0xff]  ;;  %v1787_v33 = vmov 0  }
   0x6   :  { %v44_v14 = vmul.f32 %v1867_v12, %v1867_v12  ;;  %v43_v15 = vmul.f32 %v1872_v13, %v1872_v13  ;;  %v1881_v16 = vld [vmem:[%s2862_s0 + $0x48] sm:$0xff]  ;;  %v1886_v17 = vld [vmem:[%s2862_s0 + $0x40] sm:$0xff]  ;;  %v1895_v20 = vld [vmem:[%s2862_s0 + $0x58] sm:$0xff]  ;;  %1528 = vset.pattern.permute.xlu1 %v1787_v33  ;;  %1527 = vset.pattern.permute.xlu0 %v1787_v33 }
   0x7   :  { %v46_v18 = vmul.f32 %v1881_v16, %v1881_v16  ;;  %v45_v19 = vmul.f32 %v1886_v17, %v1886_v17  ;;  %v1900_v21 = vld [vmem:[%s2862_s0 + $0x50] sm:$0xff]  ;;  %v48_v22 = vmul.f32 %v1895_v20, %v1895_v20  ;;  %v1909_v24 = vld [vmem:[%s2862_s0 + $0x68] sm:$0xff]  ;;  %v1914_v25 = vld [vmem:[%s2862_s0 + $0x60] sm:$0xff] }
   0x8   :  { %59 = vadd.xlane.f32.xlu1 %v40_v6  ;;  %55 = vadd.xlane.f32.xlu0 %v38_v7  ;;  %v47_v23 = vmul.f32 %v1900_v21, %v1900_v21  ;;  %v50_v26 = vmul.f32 %v1909_v24, %v1909_v24  ;;  %v49_v27 = vmul.f32 %v1914_v25, %v1914_v25  ;;  %v1923_v28 = vld [vmem:[%s2862_s0 + $0x78] sm:$0xff]  ;;  %v1928_v29 = vld [vmem:[%s2862_s0 + $0x70] sm:$0xff]  ;;  %v740_v32 = vld [vmem:[%s2863_s1 + $0x8] sm:$0xff] }
   0x9   :  { %v52_v30 = vmul.f32 %v1923_v28, %v1923_v28  ;;  %v51_v31 = vmul.f32 %v1928_v29, %v1928_v29  ;;  %v739_v34 = vld [vmem:[%s2863_s1] sm:$0xff]  ;;  %v741_v35 = vld [vmem:[%s2863_s1 + $0x10] sm:$0xff]  ;;  %v742_v37 = vld [vmem:[%s2863_s1 + $0x18] sm:$0xff] }
   0xa   :  { %v745_v36 = vld [vmem:[%s2863_s1 + $0x30] sm:$0xff]  ;;  %v748_v38 = vld [vmem:[%s2863_s1 + $0x48] sm:$0xff]  ;;  %v743_v39 = vld [vmem:[%s2863_s1 + $0x20] sm:$0xff] }
   0xb   :  { %v750_v40 = vld [vmem:[%s2863_s1 + $0x58] sm:$0xff]  ;;  %v744_v43 = vld [vmem:[%s2863_s1 + $0x28] sm:$0xff]  ;;  %v747_v49 = vld [vmem:[%s2863_s1 + $0x40] sm:$0xff] }
   0xc   :  { %63 = vadd.xlane.f32.xlu1 %v42_v10  ;;  %61 = vadd.xlane.f32.xlu0 %v41_v11  ;;  %v746_v46 = vld [vmem:[%s2863_s1 + $0x38] sm:$0xff]  ;;  %v749_v58 = vld [vmem:[%s2863_s1 + $0x50] sm:$0xff] }
  0x10   :  { %67 = vadd.xlane.f32.xlu1 %v44_v14  ;;  %65 = vadd.xlane.f32.xlu0 %v43_v15 }
  0x14   :  { %71 = vadd.xlane.f32.xlu1 %v46_v18  ;;  %69 = vadd.xlane.f32.xlu0 %v45_v19 }
  0x18   :  { %75 = vadd.xlane.f32.xlu1 %v48_v22  ;;  %73 = vadd.xlane.f32.xlu0 %v47_v23 }
  0x1c   :  { %79 = vadd.xlane.f32.xlu1 %v50_v26  ;;  %77 = vadd.xlane.f32.xlu0 %v49_v27 }
  0x20   :  { %83 = vadd.xlane.f32.xlu1 %v52_v30  ;;  %81 = vadd.xlane.f32.xlu0 %v51_v31 }
  0x24   :  { %279 = vadd.xlane.f32.xlu0 %v37_v4  ;;  %295 = vadd.xlane.f32.xlu1 %v45_v19 }
  0x28   :  { %281 = vadd.xlane.f32.xlu0 %v38_v7  ;;  %297 = vadd.xlane.f32.xlu1 %v46_v18 }
  0x2c   :  { %283 = vadd.xlane.f32.xlu0 %v39_v3  ;;  %299 = vadd.xlane.f32.xlu1 %v47_v23 }
  0x30   :  { %285 = vadd.xlane.f32.xlu0 %v40_v6  ;;  %301 = vadd.xlane.f32.xlu1 %v48_v22 }
  0x34   :  { %287 = vadd.xlane.f32.xlu0 %v41_v11  ;;  %303 = vadd.xlane.f32.xlu1 %v49_v27 }
  0x38   :  { %289 = vadd.xlane.f32.xlu0 %v42_v10  ;;  %305 = vadd.xlane.f32.xlu1 %v50_v26 }
  0x3c   :  { %291 = vadd.xlane.f32.xlu0 %v43_v15  ;;  %307 = vadd.xlane.f32.xlu1 %v51_v31 }
  0x40   :  { %293 = vadd.xlane.f32.xlu0 %v44_v14  ;;  %309 = vadd.xlane.f32.xlu1 %v52_v30 }
  0x51   :  { %760 = vperm.xlu1 %1528, %v740_v32  }
  0x55   :  { %763 = vperm.xlu1 %1528, %v741_v35  }
  0x56   :  { %757 = vperm.xlu0 %1527, %v739_v34  }
  0x59   :  { %766 = vperm.xlu1 %1528, %v742_v37  }
  0x5a   :  { %775 = vperm.xlu0 %1527, %v745_v36  }
  0x5d   :  { %769 = vperm.xlu1 %1528, %v743_v39  }
  0x5e   :  { %784 = vperm.xlu0 %1527, %v748_v38  }
  0x61   :  { %772 = vperm.xlu1 %1528, %v744_v43  }
  0x62   :  { %790 = vperm.xlu0 %1527, %v750_v40  }
  0x65   :  { %778 = vperm.xlu1 %1528, %v746_v46  }
  0x69   :  { %781 = vperm.xlu1 %1528, %v747_v49  }
  0x6d   :  { %787 = vperm.xlu1 %1528, %v749_v58  }
  0x91   :  { %v58_v41 = vpop.xlane.xlu1 %57  ;;  %v54_v42 = vpop.xlane.xlu0 %53 }
  0x92   :  { %1529 = vrsqrt.f32 %v58_v41  ;;  %vm101_vm0 = vcmp.eq.f32.partialorder %v58_v41, inf  ;;  %vm103_vm1 = vcmp.eq.f32.partialorder %v58_v41, 0.0  ;;  %v104_v53 = vand.u32 2147483648, %v58_v41 }
  0x93   :  { %1531 = vrsqrt.f32 %v54_v42  ;;  %vm87_vm2 = vcmp.eq.f32.partialorder %v54_v42, inf  ;;  %vm89_vm3 = vcmp.eq.f32.partialorder %v54_v42, 0.0  ;;  %v90_v57 = vand.u32 2147483648, %v54_v42 }
  0x95   :  { %v60_v44 = vpop.xlane.xlu1 %59  ;;  %v56_v45 = vpop.xlane.xlu0 %55 }
  0x96   :  { %1533 = vrsqrt.f32 %v60_v44  ;;  %vm108_vm4 = vcmp.eq.f32.partialorder %v60_v44, inf  ;;  %vm110_vm5 = vcmp.eq.f32.partialorder %v60_v44, 0.0  ;;  %v111_v60 = vand.u32 2147483648, %v60_v44 }
  0x97   :  { %1535 = vrsqrt.f32 %v56_v45  ;;  %vm94_vm6 = vcmp.eq.f32.partialorder %v56_v45, inf  ;;  %vm96_vm7 = vcmp.eq.f32.partialorder %v56_v45, 0.0  ;;  %v97_v10 = vand.u32 2147483648, %v56_v45 }
  0x99   :  { %v1964_v47 = vpop.xlane.xlu1 %63  ;;  %v1966_v48 = vpop.xlane.xlu0 %61 }
  0x9a   :  { %1537 = vrsqrt.f32 %v1964_v47  ;;  %vm122_vm8 = vcmp.eq.f32.partialorder %v1964_v47, inf  ;;  %vm124_vm9 = vcmp.eq.f32.partialorder %v1964_v47, 0.0  ;;  %v125_v22 = vand.u32 2147483648, %v1964_v47 }
  0x9b   :  { %1539 = vrsqrt.f32 %v1966_v48  ;;  %vm115_vm10 = vcmp.eq.f32.partialorder %v1966_v48, inf  ;;  %v118_v30 = vand.u32 2147483648, %v1966_v48  ;;  %vm117_vm11 = vcmp.eq.f32.partialorder %v1966_v48, 0.0 }
  0x9c   :  { %v1530_v50 = vpop.eup %1529 }
  0x9d   :  { %v1532_v51 = vpop.eup %1531  ;;  %v100_v52 = vmul.f32 %v1530_v50, %v58_v41  ;;  %v1973_v54 = vpop.xlane.xlu1 %67 }
  0x9e   :  { %v1975_v55 = vpop.xlane.xlu0 %65  ;;  %v86_v56 = vmul.f32 %v1532_v51, %v54_v42  ;;  %1541 = vrsqrt.f32 %v1973_v54  ;;  %vm136_vm12 = vcmp.eq.f32.partialorder %v1973_v54, inf  ;;  %v139_v40 = vand.u32 2147483648, %v1973_v54 }
  0x9f   :  { %v102_v59 = vsel %vm101_vm0, %v58_v41, %v100_v52  ;;  %1543 = vrsqrt.f32 %v1975_v55  ;;  %vm129_vm13 = vcmp.eq.f32.partialorder %v1975_v55, inf  ;;  %vm138_vm14 = vcmp.eq.f32.partialorder %v1973_v54, 0.0 }
  0xa0   :  { %v1534_v61 = vpop.eup %1533  ;;  %v105_v62 = vsel %vm103_vm1, %v104_v53, %v102_v59  ;;  %v88_v63 = vsel %vm87_vm2, %v54_v42, %v86_v56  ;;  %v132_v53 = vand.u32 2147483648, %v1975_v55  ;;  %vm131_vm15 = vcmp.eq.f32.partialorder %v1975_v55, 0.0 }
  0xa1   :  { %v1536_v3 = vpop.eup %1535  ;;  %v199_v4 = vmax.f32 %v105_v62, 1e-12  ;;  %v91_v6 = vsel %vm89_vm3, %v90_v57, %v88_v63  ;;  %v107_v7 = vmul.f32 %v1534_v61, %v60_v44  ;;  %v1985_v11 = vpop.xlane.xlu1 %71 }
  0xa2   :  { %v1987_v14 = vpop.xlane.xlu0 %69  ;;  %v197_v15 = vmax.f32 %v91_v6, 1e-12  ;;  %v93_v18 = vmul.f32 %v1536_v3, %v56_v45  ;;  %1545 = vrsqrt.f32 %v1985_v11  ;;  %vm150_vm0 = vcmp.eq.f32.partialorder %v1985_v11, inf }
  0xa3   :  { %v109_v19 = vsel %vm108_vm4, %v60_v44, %v107_v7  ;;  %1547 = vrcp.f32 %v199_v4  ;;  %vm152_vm1 = vcmp.eq.f32.partialorder %v1985_v11, 0.0  ;;  %vm143_vm2 = vcmp.eq.f32.partialorder %v1987_v14, inf }
  0xa4   :  { %v1538_v23 = vpop.eup %1537  ;;  %v112_v26 = vsel %vm110_vm5, %v111_v60, %v109_v19  ;;  %v95_v27 = vsel %vm94_vm6, %v56_v45, %v93_v18  ;;  %1549 = vrsqrt.f32 %v1987_v14  ;;  %vm145_vm3 = vcmp.eq.f32.partialorder %v1987_v14, 0.0 }
  0xa5   :  { %v1540_v31 = vpop.eup %1539  ;;  %v200_v32 = vmax.f32 %v112_v26, 1e-12  ;;  %v98_v33 = vsel %vm96_vm7, %v97_v10, %v95_v27  ;;  %v121_v34 = vmul.f32 %v1538_v23, %v1964_v47  ;;  %v2001_v35 = vpop.xlane.xlu1 %75  ;;  %1551 = vrcp.f32 %v197_v15 }
  0xa6   :  { %v2003_v36 = vpop.xlane.xlu0 %73  ;;  %v198_v37 = vmax.f32 %v98_v33, 1e-12  ;;  %v114_v38 = vmul.f32 %v1540_v31, %v1966_v48  ;;  %v146_v23 = vand.u32 2147483648, %v1987_v14  ;;  %vm164_vm4 = vcmp.eq.f32.partialorder %v2001_v35, inf }
  0xa7   :  { %1553 = vrcp.f32 %v200_v32  ;;  %v123_v39 = vsel %vm122_vm8, %v1964_v47, %v121_v34  ;;  %vm157_vm5 = vcmp.eq.f32.partialorder %v2003_v36, inf  ;;  %vm166_vm6 = vcmp.eq.f32.partialorder %v2001_v35, 0.0 }
  0xa8   :  { %v1542_v41 = vpop.eup %1541  ;;  %1555 = vrcp.f32 %v198_v37  ;;  %v126_v42 = vsel %vm124_vm9, %v125_v22, %v123_v39  ;;  %v116_v43 = vsel %vm115_vm10, %v1966_v48, %v114_v38  ;;  %v153_v22 = vand.u32 2147483648, %v1985_v11 }
  0xa9   :  { %v1544_v44 = vpop.eup %1543  ;;  %v202_v45 = vmax.f32 %v126_v42, 1e-12  ;;  %v119_v46 = vsel %vm117_vm11, %v118_v30, %v116_v43  ;;  %v135_v49 = vmul.f32 %v1542_v41, %v1973_v54  ;;  %1557 = vrsqrt.f32 %v2001_v35  ;;  %v2020_v50 = vpop.xlane.xlu1 %79 }
  0xaa   :  { %v2022_v51 = vpop.xlane.xlu0 %77  ;;  %v201_v52 = vmax.f32 %v119_v46, 1e-12  ;;  %v128_v47 = vmul.f32 %v1544_v44, %v1975_v55  ;;  %1559 = vrsqrt.f32 %v2003_v36  ;;  %v167_v43 = vand.u32 2147483648, %v2001_v35 }
  0xab   :  { %v137_v48 = vsel %vm136_vm12, %v1973_v54, %v135_v49  ;;  %1561 = vrcp.f32 %v202_v45  ;;  %v160_v46 = vand.u32 2147483648, %v2003_v36  ;;  %vm159_vm7 = vcmp.eq.f32.partialorder %v2003_v36, 0.0 }
  0xac   :  { %v1546_v56 = vpop.eup %1545  ;;  %v130_v57 = vsel %vm129_vm13, %v1975_v55, %v128_v47  ;;  %v140_v58 = vsel %vm138_vm14, %v139_v40, %v137_v48  ;;  %1563 = vrsqrt.f32 %v2020_v50  ;;  %vm178_vm8 = vcmp.eq.f32.partialorder %v2020_v50, inf }
  0xad   :  { %v2036_v59 = vpop.xlane.xlu1 %83  ;;  %v1548_v61 = vpop.eup %1547  ;;  %1565 = vrcp.f32 %v201_v52  ;;  %v149_v54 = vmul.f32 %v1546_v56, %v1985_v11  ;;  %v133_v63 = vsel %vm131_vm15, %v132_v53, %v130_v57  ;;  %v204_v4 = vmax.f32 %v140_v58, 1e-12 }
  0xae   :  { %v2038_v60 = vpop.xlane.xlu0 %81  ;;  %v1550_v62 = vpop.eup %1549  ;;  %1567 = vrsqrt.f32 %v2022_v51  ;;  %v203_v18 = vmax.f32 %v133_v63, 1e-12  ;;  %v218_v38 = vmul.f32 %v1548_v61, %v1825_v0  ;;  %v181_v61 = vand.u32 2147483648, %v2020_v50 }
  0xaf   :  { %v1552_v3 = vpop.eup %1551  ;;  %v142_v6 = vmul.f32 %v1550_v62, %v1987_v14  ;;  %v151_v19 = vsel %vm150_vm0, %v1985_v11, %v149_v54  ;;  %1569 = vrsqrt.f32 %v2036_v59  ;;  %vm171_vm9 = vcmp.eq.f32.partialorder %v2022_v51, inf }
  0xb0   :  { %v214_v27 = vmul.f32 %v1552_v3, %v1830_v1  ;;  %1571 = vrcp.f32 %v204_v4  ;;  %v154_v40 = vsel %vm152_vm1, %v153_v22, %v151_v19  ;;  %vm180_vm10 = vcmp.eq.f32.partialorder %v2020_v50, 0.0 }
  0xb1   :  { %v1554_v55 = vpop.eup %1553  ;;  %v2048_v10 = vpop.xlane.xlu1 %295  ;;  %v144_v33 = vsel %vm143_vm2, %v1987_v14, %v142_v6  ;;  %1573 = vrsqrt.f32 %v2038_v60  ;;  %v206_v11 = vmax.f32 %v154_v40, 1e-12  ;;  %v174_v6 = vand.u32 2147483648, %v2022_v51 }
  0xb2   :  { %v2046_v7 = vpop.xlane.xlu0 %279  ;;  %v1556_v15 = vpop.eup %1555  ;;  %v220_v31 = vmul.f32 %v1554_v55, %v1835_v2  ;;  %1575 = vrcp.f32 %v203_v18  ;;  %v147_v42 = vsel %vm145_vm3, %v146_v23, %v144_v33  ;;  %vm173_vm11 = vcmp.eq.f32.partialorder %v2022_v51, 0.0 }
  0xb3   :  { %v1558_v26 = vpop.eup %1557  ;;  %v216_v30 = vmul.f32 %v1556_v15, %v1844_v5  ;;  %v205_v48 = vmax.f32 %v147_v42, 1e-12  ;;  %1577 = vrcp.f32 %v206_v11  ;;  %vm192_vm12 = vcmp.eq.f32.partialorder %v2036_v59, inf }
  0xb4   :  { %v1560_v32 = vpop.eup %1559  ;;  %v163_v34 = vmul.f32 %v1558_v26, %v2001_v35  ;;  %v1478_v0 = vpack.c.bf16 %v220_v31, %v218_v38  ;;  %v195_v26 = vand.u32 2147483648, %v2036_v59  ;;  %vm185_vm13 = vcmp.eq.f32.partialorder %v2038_v60, inf }
  0xb5   :  { %v1474_v37 = vpack.c.bf16 %v216_v30, %v214_v27  ;;  %v2067_v5 = vpop.xlane.xlu1 %297  ;;  %v1562_v39 = vpop.eup %1561  ;;  %v156_v14 = vmul.f32 %v1560_v32, %v2003_v36  ;;  %1579 = vrcp.f32 %v205_v48  ;;  %vm194_vm14 = vcmp.eq.f32.partialorder %v2036_v59, 0.0 }
  0xb6   :  { %v2065_v2 = vpop.xlane.xlu0 %281  ;;  %v1564_v41 = vpop.eup %1563  ;;  %v165_v45 = vsel %vm164_vm4, %v2001_v35, %v163_v34  ;;  %v224_v58 = vmul.f32 %v1562_v39, %v1853_v8  ;;  %1581 = vrsqrt.f32 %v2046_v7  ;;  %v188_v39 = vand.u32 2147483648, %v2038_v60 }
  0xb7   :  { %1475 = vmatprep.subr.bf16.mxu0 %v1474_v37  ;;  %1506 = vmatprep.subr.bf16.mxu1 %v1474_v37  ;;  %v1566_v44 = vpop.eup %1565  ;;  %v177_v49 = vmul.f32 %v1564_v41, %v2020_v50  ;;  %v158_v53 = vsel %vm157_vm5, %v2003_v36, %v156_v14  ;;  %v168_v56 = vsel %vm166_vm6, %v167_v43, %v165_v45  ;;  %1583 = vrsqrt.f32 %v2048_v10 }
  0xb8   :  { %1477 = vmatpush3.bf16.xpose.msra.mxu0 %v1474_v37  ;;  %1514 = vmatpush3.bf16.xpose.msra.mxu1 %v1474_v37  ;;  %v1568_v35 = vpop.eup %1567  ;;  %v222_v57 = vmul.f32 %v1566_v44, %v1858_v9  ;;  %v161_v63 = vsel %vm159_vm7, %v160_v46, %v158_v53  ;;  %v208_v8 = vmax.f32 %v168_v56, 1e-12  ;;  %vm187_vm15 = vcmp.eq.f32.partialorder %v2038_v60, 0.0 }
  0xb9   :  { %1479 = vmatprep.subr.bf16.mxu0 %v1478_v0  ;;  %1507 = vmatprep.subr.bf16.mxu1 %v1478_v0  ;;  %v2082_v47 = vpop.xlane.xlu1 %299  ;;  %v170_v54 = vmul.f32 %v1568_v35, %v2022_v51  ;;  %v1570_v62 = vpop.eup %1569  ;;  %v179_v3 = vsel %vm178_vm8, %v2020_v50, %v177_v49  ;;  %v207_v22 = vmax.f32 %v161_v63, 1e-12  ;;  %vm313_vm0 = vcmp.eq.f32.partialorder %v2046_v7, inf }
  0xba   :  { %v2080_v52 = vpop.xlane.xlu0 %283  ;;  %v1572_v9 = vpop.eup %1571  ;;  %v1482_v18 = vpack.c.bf16 %v224_v58, %v222_v57  ;;  %v182_v23 = vsel %vm180_vm10, %v181_v61, %v179_v3  ;;  %v191_v50 = vmul.f32 %v1570_v62, %v2036_v59  ;;  %1585 = vrcp.f32 %v208_v8 }
  0xbb   :  { %v1574_v55 = vpop.eup %1573  ;;  %v172_v15 = vsel %vm171_vm9, %v2022_v51, %v170_v54  ;;  %v210_v33 = vmax.f32 %v182_v23, 1e-12  ;;  %v228_v37 = vmul.f32 %v1572_v9, %v1867_v12  ;;  %1587 = vrsqrt.f32 %v2065_v2 }
  0xbc   :  { %v1576_v19 = vpop.eup %1575  ;;  %v175_v31 = vsel %vm173_vm11, %v174_v6, %v172_v15  ;;  %v184_v32 = vmul.f32 %v1574_v55, %v2038_v60  ;;  %1589 = vrcp.f32 %v207_v22  ;;  %v193_v38 = vsel %vm192_vm12, %v2036_v59, %v191_v50 }
  0xbd   :  { %v2098_v4 = vpop.xlane.xlu1 %301  ;;  %v226_v34 = vmul.f32 %v1576_v19, %v1872_v13  ;;  %v209_v51 = vmax.f32 %v175_v31, 1e-12  ;;  %1591 = vrsqrt.f32 %v2067_v5  ;;  %v1578_v13 = vpop.eup %1577  ;;  %v196_v14 = vsel %vm194_vm14, %v195_v26, %v193_v38 }
  0xbe   :  { %v2096_v36 = vpop.xlane.xlu0 %285  ;;  %v186_v40 = vsel %vm185_vm13, %v2038_v60, %v184_v32  ;;  %1593 = vrsqrt.f32 %v2080_v52  ;;  %v232_v11 = vmul.f32 %v1578_v13, %v1881_v16  ;;  %v316_v48 = vand.u32 2147483648, %v2046_v7 }
  0xbf   :  { %1595 = vrcp.f32 %v210_v33  ;;  %v1486_v41 = vpack.c.bf16 %v228_v37, %v226_v34  ;;  %v1580_v59 = vpop.eup %1579  ;;  %v189_v43 = vsel %vm187_vm15, %v188_v39, %v186_v40  ;;  %vm369_vm1 = vcmp.eq.f32.partialorder %v2048_v10, inf }
  0xc0   :  { %1481 = vmatpush3.bf16.xpose.msra.mxu0 %v1478_v0  ;;  %1515 = vmatpush3.bf16.xpose.msra.mxu1 %v1478_v0  ;;  %v1582_v60 = vpop.eup %1581  ;;  %v212_v0 = vmax.f32 %v196_v14, 1e-12  ;;  %v230_v45 = vmul.f32 %v1580_v59, %v1886_v17  ;;  %v211_v49 = vmax.f32 %v189_v43, 1e-12  ;;  %v372_v56 = vand.u32 2147483648, %v2048_v10 }
  0xc1   :  { %1483 = vmatprep.subr.bf16.mxu0 %v1482_v18  ;;  %1508 = vmatprep.subr.bf16.mxu1 %v1482_v18  ;;  %v2110_v30 = vpop.xlane.xlu1 %303  ;;  %v1584_v44 = vpop.eup %1583  ;;  %vm320_vm2 = vcmp.eq.f32.partialorder %v2065_v2, inf  ;;  %v323_v61 = vand.u32 2147483648, %v2065_v2  ;;  %vm376_vm3 = vcmp.eq.f32.partialorder %v2067_v5, inf  ;;  %v379_v54 = vand.u32 2147483648, %v2067_v5 }
  0xc2   :  { %v2108_v27 = vpop.xlane.xlu0 %287  ;;  %v312_v63 = vmul.f32 %v1582_v60, %v2046_v7  ;;  %vm327_vm4 = vcmp.eq.f32.partialorder %v2080_v52, inf  ;;  %v1490_v3 = vpack.c.bf16 %v232_v11, %v230_v45  ;;  %v368_v8 = vmul.f32 %v1584_v44, %v2048_v10 }
  0xc3   :  { %1597 = vrsqrt.f32 %v2108_v27  ;;  %v330_v55 = vand.u32 2147483648, %v2080_v52  ;;  %vm383_vm5 = vcmp.eq.f32.partialorder %v2082_v47, inf  ;;  %v337_v19 = vand.u32 2147483648, %v2096_v36 }
  0xc4   :  { %1599 = vrcp.f32 %v209_v51  ;;  %v1586_v46 = vpop.eup %1585  ;;  %v393_v31 = vand.u32 2147483648, %v2098_v4  ;;  %vm341_vm6 = vcmp.eq.f32.partialorder %v2108_v27, inf  ;;  %vm334_vm7 = vcmp.eq.f32.partialorder %v2096_v36, inf }
  0xc5   :  { %v2130_v42 = vpop.xlane.xlu1 %305  ;;  %1601 = vrsqrt.f32 %v2082_v47  ;;  %v1588_v35 = vpop.eup %1587  ;;  %v236_v23 = vmul.f32 %v1586_v46, %v1895_v20  ;;  %vm390_vm8 = vcmp.eq.f32.partialorder %v2098_v4, inf  ;;  %vm343_vm9 = vcmp.eq.f32.partialorder %v2108_v27, 0.0 }
  0xc6   :  { %v2128_v12 = vpop.xlane.xlu0 %289  ;;  %1603 = vrsqrt.f32 %v2096_v36  ;;  %v1590_v58 = vpop.eup %1589  ;;  %v319_v6 = vmul.f32 %v1588_v35, %v2065_v2  ;;  %v344_v20 = vand.u32 2147483648, %v2108_v27  ;;  %vm322_vm10 = vcmp.eq.f32.partialorder %v2065_v2, 0.0 }
  0xc7   :  { %1605 = vrsqrt.f32 %v2098_v4  ;;  %v1592_v62 = vpop.eup %1591  ;;  %v234_v22 = vmul.f32 %v1590_v58, %v1900_v21  ;;  %v400_v39 = vand.u32 2147483648, %v2110_v30  ;;  %v314_v40 = vsel %vm313_vm0, %v2046_v7, %v312_v63 }
  0xc8   :  { %1485 = vmatpush3.bf16.xpose.msra.mxu0 %v1482_v18  ;;  %1516 = vmatpush3.bf16.xpose.msra.mxu1 %v1482_v18  ;;  %1607 = vrsqrt.f32 %v2128_v12  ;;  %v1594_v9 = vpop.eup %1593  ;;  %v386_v18 = vand.u32 2147483648, %v2082_v47  ;;  %v375_v26 = vmul.f32 %v1592_v62, %v2067_v5  ;;  %v2179_v51 = vsel %vm320_vm2, %v2065_v2, %v319_v6 }
  0xc9   :  { %1487 = vmatprep.subr.bf16.mxu0 %v1486_v41  ;;  %1509 = vmatprep.subr.bf16.mxu1 %v1486_v41  ;;  %v2146_v57 = vpop.xlane.xlu1 %307  ;;  %1609 = vrcp.f32 %v212_v0  ;;  %v1596_v15 = vpop.eup %1595  ;;  %v326_v34 = vmul.f32 %v1594_v9, %v2080_v52  ;;  %vm378_vm11 = vcmp.eq.f32.partialorder %v2067_v5, 0.0  ;;  %vm397_vm12 = vcmp.eq.f32.partialorder %v2110_v30, inf }
  0xca   :  { %v2140_v53 = vpop.xlane.xlu0 %291  ;;  %1611 = vrsqrt.f32 %v2110_v30  ;;  %vm315_vm13 = vcmp.eq.f32.partialorder %v2046_v7, 0.0  ;;  %v2197_v43 = vsel %vm376_vm3, %v2067_v5, %v375_v26  ;;  %vm329_vm14 = vcmp.eq.f32.partialorder %v2080_v52, 0.0 }
  0xcb   :  { %1613 = vrcp.f32 %v211_v49  ;;  %vm348_vm15 = vcmp.eq.f32.partialorder %v2128_v12, inf  ;;  %v317_v60 = vsel %vm315_vm13, %v316_v48, %v314_v40  ;;  %v2207_v44 = vsel %vm327_vm4, %v2080_v52, %v326_v34 }
  0xcc   :  { %1615 = vrsqrt.f32 %v2130_v42  ;;  %vm385_vm0 = vcmp.eq.f32.partialorder %v2082_v47, 0.0  ;;  %vm350_vm2 = vcmp.eq.f32.partialorder %v2128_v12, 0.0  ;;  %v351_v45 = vand.u32 2147483648, %v2128_v12 }
  0xcd   :  { %v1598_v50 = vpop.eup %1597  ;;  %1617 = vrsqrt.f32 %v2140_v53  ;;  %v2174_v37 = vpop.xlane.xlu1 %309  ;;  %v423_v11 = vmax.f32 %v317_v60, 1e-12  ;;  %v370_v48 = vsel %vm369_vm1, %v2048_v10, %v368_v8  ;;  %vm371_vm3 = vcmp.eq.f32.partialorder %v2048_v10, 0.0 }
  0xce   :  { %v2166_v32 = vpop.xlane.xlu0 %293  ;;  %v1600_v33 = vpop.eup %1599  ;;  %1619 = vrsqrt.f32 %v2146_v57  ;;  %v340_v14 = vmul.f32 %v1598_v50, %v2108_v27  ;;  %v407_v63 = vand.u32 2147483648, %v2130_v42  ;;  %vm392_vm1 = vcmp.eq.f32.partialorder %v2098_v4, 0.0 }
  0xcf   :  { %v1602_v38 = vpop.eup %1601  ;;  %1621 = vrsqrt.f32 %v2166_v32  ;;  %v238_v7 = vmul.f32 %v1600_v33, %v1914_v25  ;;  %vm411_vm13 = vcmp.eq.f32.partialorder %v2146_v57, inf  ;;  %vm362_vm4 = vcmp.eq.f32.partialorder %v2166_v32, inf }
  0xd0   :  { %1489 = vmatpush3.bf16.xpose.msra.mxu0 %v1486_v41  ;;  %1517 = vmatpush3.bf16.xpose.msra.mxu1 %v1486_v41  ;;  %v1604_v13 = vpop.eup %1603  ;;  %v2189_v41 = vpack.c.bf16 %v236_v23, %v234_v22  ;;  %1623 = vrsqrt.f32 %v2174_v37  ;;  %v382_v49 = vmul.f32 %v1602_v38, %v2082_v47  ;;  %v342_v62 = vsel %vm341_vm6, %v2108_v27, %v340_v14 }
  0xd1   :  { %1491 = vmatprep.subr.bf16.mxu0 %v1490_v3  ;;  %1510 = vmatprep.subr.bf16.mxu1 %v1490_v3  ;;  %v1606_v59 = vpop.eup %1605  ;;  %v333_v58 = vmul.f32 %v1604_v13, %v2096_v36  ;;  %1625 = vrcp.f32 %v423_v11  ;;  %v373_v22 = vsel %vm371_vm3, %v372_v56, %v370_v48  ;;  %v358_v23 = vand.u32 2147483648, %v2140_v53 }
  0xd2   :  { %v1608_v0 = vpop.eup %1607  ;;  %v389_v8 = vmul.f32 %v1606_v59, %v2098_v4  ;;  %v384_v50 = vsel %vm383_vm5, %v2082_v47, %v382_v49  ;;  %v345_v26 = vsel %vm343_vm9, %v344_v20, %v342_v62  ;;  %vm406_vm3 = vcmp.eq.f32.partialorder %v2130_v42, 0.0 }
  0xd3   :  { %v1610_v46 = vpop.eup %1609  ;;  %v347_v6 = vmul.f32 %v1608_v0, %v2128_v12  ;;  %v414_v56 = vand.u32 2147483648, %v2146_v57  ;;  %v365_v38 = vand.u32 2147483648, %v2166_v32  ;;  %v335_v27 = vsel %vm334_vm7, %v2096_v36, %v333_v58 }
  0xd4   :  { %v1612_v35 = vpop.eup %1611  ;;  %v391_v20 = vsel %vm390_vm8, %v2098_v4, %v389_v8  ;;  %vm357_vm5 = vcmp.eq.f32.partialorder %v2140_v53, 0.0  ;;  %vm418_vm9 = vcmp.eq.f32.partialorder %v2174_v37, inf  ;;  %v427_v59 = vmax.f32 %v345_v26, 1e-12 }
  0xd5   :  { %v1614_v9 = vpop.eup %1613  ;;  %v396_v10 = vmul.f32 %v1612_v35, %v2110_v30  ;;  %v349_v13 = vsel %vm348_vm15, %v2128_v12, %v347_v6  ;;  %vm364_vm6 = vcmp.eq.f32.partialorder %v2166_v32, 0.0  ;;  %v244_v0 = vmul.f32 %v1610_v46, %v1923_v28 }
  0xd6   :  { %v242_v60 = vmul.f32 %v1614_v9, %v1928_v29  ;;  %v324_v11 = vsel %vm322_vm10, %v323_v61, %v2179_v51  ;;  %vm420_vm7 = vcmp.eq.f32.partialorder %v2174_v37, 0.0  ;;  %v380_v28 = vsel %vm378_vm11, %v379_v54, %v2197_v43 }
  0xd7   :  { %v352_v2 = vsel %vm350_vm2, %v351_v45, %v349_v13  ;;  %v421_v51 = vand.u32 2147483648, %v2174_v37  ;;  %v424_v54 = vmax.f32 %v324_v11, 1e-12  ;;  %v387_v12 = vsel %vm385_vm0, %v386_v18, %v384_v50  ;;  %v1754_v13 = vld [vmem:[%s2862_s0 + $0x10] sm:$0xff] }
  0xd8   :  { %1493 = vmatpush3.bf16.xpose.msra.mxu0 %v1490_v3  ;;  %1518 = vmatpush3.bf16.xpose.msra.mxu1 %v1490_v3  ;;  %v240_v3 = vmul.f32 %v1596_v15, %v1909_v24  ;;  %v431_v24 = vmax.f32 %v373_v22, 1e-12  ;;  %v1616_v15 = vpop.eup %1615  ;;  %v1502_v45 = vpack.c.bf16 %v244_v0, %v242_v60  ;;  %v432_v35 = vmax.f32 %v380_v28, 1e-12 }
  0xd9   :  { %1495 = vmatprep.subr.bf16.mxu0 %v2189_v41  ;;  %1511 = vmatprep.subr.bf16.mxu1 %v2189_v41  ;;  %v1618_v33 = vpop.eup %1617  ;;  %v403_v48 = vmul.f32 %v1616_v15, %v2130_v42  ;;  %v428_v62 = vmax.f32 %v352_v2, 1e-12  ;;  %vm2868_vm8 = vcmp.eq.f32.partialorder %v2130_v42, inf  ;;  %vm2869_vm10 = vcmp.eq.f32.partialorder %v2096_v36, 0.0 }
  0xda   :  { %v1498_v34 = vpack.c.bf16 %v240_v3, %v238_v7  ;;  %1627 = vrcp.f32 %v431_v24  ;;  %v1620_v40 = vpop.eup %1619  ;;  %v398_v7 = vsel %vm397_vm12, %v2110_v30, %v396_v10  ;;  %v354_v46 = vmul.f32 %v1618_v33, %v2140_v53 }
  0xdb   :  { %v1622_v14 = vpop.eup %1621  ;;  %v410_v61 = vmul.f32 %v1620_v40, %v2146_v57  ;;  %1629 = vrcp.f32 %v427_v59  ;;  %v405_v52 = vsel %vm2868_vm8, %v2130_v42, %v403_v48  ;;  %v433_v3 = vmax.f32 %v387_v12, 1e-12  ;;  %v1759_v12 = vld [vmem:[%s2862_s0 + $0x28] sm:$0xff] }
  0xdc   :  { %v1624_v49 = vpop.eup %1623  ;;  %v361_v5 = vmul.f32 %v1622_v14, %v2166_v32  ;;  %v394_v9 = vsel %vm392_vm1, %v393_v31, %v391_v20  ;;  %vm2870_vm11 = vcmp.eq.f32.partialorder %v2140_v53, inf  ;;  %1631 = vrcp.f32 %v424_v54 }
  0xdd   :  { %v417_v43 = vmul.f32 %v1624_v49, %v2174_v37  ;;  %v1626_v58 = vpop.eup %1625  ;;  %v412_v47 = vsel %vm411_vm13, %v2146_v57, %v410_v61  ;;  %v356_v8 = vsel %vm2870_vm11, %v2140_v53, %v354_v46  ;;  %vm2871_vm12 = vcmp.eq.f32.partialorder %v2110_v30, 0.0  ;;  %v1755_v49 = vld [vmem:[%s2862_s0 + $0x18] sm:$0xff] }
  0xde   :  { %v440_v18 = vmul.f32 %v1626_v58, %v1830_v1  ;;  %v363_v36 = vsel %vm362_vm4, %v2166_v32, %v361_v5  ;;  %v401_v1 = vsel %vm2871_vm12, %v400_v39, %v398_v7  ;;  %1633 = vrcp.f32 %v432_v35  ;;  %v1756_v7 = vld [vmem:[%s2862_s0 + $0x58] sm:$0xff] }
  0xdf   :  { %v419_v4 = vsel %vm418_vm9, %v2174_v37, %v417_v43  ;;  %v408_v6 = vsel %vm406_vm3, %v407_v63, %v405_v52  ;;  %v434_v30 = vmax.f32 %v394_v9, 1e-12  ;;  %v359_v24 = vsel %vm357_vm5, %v358_v23, %v356_v8  ;;  %v1761_v35 = vld [vmem:[%s2862_s0 + $0x38] sm:$0xff] }
  0xe0   :  { %1497 = vmatpush3.bf16.xpose.msra.mxu0 %v2189_v41  ;;  %1519 = vmatpush3.bf16.xpose.msra.mxu1 %v2189_v41  ;;  %v331_v41 = vsel %vm329_vm14, %v330_v55, %v2207_v44  ;;  %v338_v44 = vsel %vm2869_vm10, %v337_v19, %v335_v27  ;;  %vm2872_vm14 = vcmp.eq.f32.partialorder %v2146_v57, 0.0  ;;  %v435_v42 = vmax.f32 %v401_v1, 1e-12 }
  0xe1   :  { %1499 = vmatprep.subr.bf16.mxu0 %v1498_v34  ;;  %1512 = vmatprep.subr.bf16.mxu1 %v1498_v34  ;;  %v425_v55 = vmax.f32 %v331_v41, 1e-12  ;;  %v426_v31 = vmax.f32 %v338_v44, 1e-12  ;;  %v415_v39 = vsel %vm2872_vm14, %v414_v56, %v412_v47  ;;  %v436_v63 = vmax.f32 %v408_v6, 1e-12 }
  0xe2   :  { %1450 = vmatprep.mubr.f32.mxu0 %v440_v18  ;;  %v437_v57 = vmax.f32 %v415_v39, 1e-12  ;;  %v422_v15 = vsel %vm420_vm7, %v421_v51, %v419_v4  ;;  %v429_v50 = vmax.f32 %v359_v24, 1e-12  ;;  %v1758_v41 = vld [vmem:[%s2862_s0 + $0x68] sm:$0xff] }
  0xe3   :  { %1635 = vrcp.f32 %v425_v55  ;;  %v438_v26 = vmax.f32 %v422_v15, 1e-12 }
  0xe4   :  { %v1628_v19 = vpop.eup %1627  ;;  %1637 = vrcp.f32 %v433_v3 }
  0xe5   :  { %v456_v22 = vmul.f32 %v1628_v19, %v1886_v17  ;;  %1639 = vrcp.f32 %v428_v62  ;;  %v366_v17 = vsel %vm364_vm6, %v365_v38, %v363_v36  ;;  %v1630_v53 = vpop.eup %1629  ;;  %v1753_v38 = vld [vmem:[%s2862_s0 + $0x8] sm:$0xff] }
  0xe6   :  { %1641 = vrcp.f32 %v426_v31  ;;  %v430_v23 = vmax.f32 %v366_v17, 1e-12  ;;  %v1632_v10 = vpop.eup %1631 }
  0xe7   :  { %1462 = vmatprep.mubr.f32.mxu1 %v456_v22  ;;  %1643 = vrcp.f32 %v434_v30  ;;  %v442_v40 = vmul.f32 %v1753_v38, %v1632_v10  ;;  %v752_v38 = vld [vmem:[%s2863_s1 + $0x68] sm:$0xff] }
  0xe8   :  { %1501 = vmatpush3.bf16.xpose.msra.mxu0 %v1498_v34  ;;  %1520 = vmatpush3.bf16.xpose.msra.mxu1 %v1498_v34  ;;  %1645 = vrcp.f32 %v435_v42  ;;  %v1634_v32 = vpop.eup %1633 }
  0xe9   :  { %1503 = vmatprep.subr.bf16.mxu0 %v1502_v45  ;;  %1513 = vmatprep.subr.bf16.mxu1 %v1502_v45  ;;  %1647 = vrcp.f32 %v436_v63  ;;  %v458_v27 = vmul.f32 %v1634_v32, %v1881_v16 }
  0xea   :  { %1649 = vrcp.f32 %v437_v57 }
  0xeb   :  { %1651 = vrcp.f32 %v429_v50 }
  0xec   :  { %1653 = vrcp.f32 %v430_v23 }
  0xed   :  { %v1636_v56 = vpop.eup %1635  ;;  %1655 = vrcp.f32 %v438_v26 }
  0xee   :  { %v1638_v33 = vpop.eup %1637  ;;  %v444_v14 = vmul.f32 %v1754_v13, %v1636_v56 }
  0xef   :  { %v1640_v34 = vpop.eup %1639  ;;  %v460_v59 = vmul.f32 %v1638_v33, %v1900_v21  ;;  %v1757_v21 = vld [vmem:[%s2862_s0 + $0x20] sm:$0xff] }
  0xf0   :  { %1505 = vmatpush3.bf16.xpose.msra.mxu0 %v1502_v45  ;;  %1521 = vmatpush3.bf16.xpose.msra.mxu1 %v1502_v45  ;;  %v1642_v37 = vpop.eup %1641  ;;  %v448_v2 = vmul.f32 %v1757_v21, %v1630_v53  ;;  %v450_v43 = vmul.f32 %v1759_v12, %v1640_v34 }
  0xf1   :  { %v1644_v20 = vpop.eup %1643  ;;  %v446_v16 = vmul.f32 %v1755_v49, %v1642_v37  ;;  %v751_v37 = vld [vmem:[%s2863_s1 + $0x60] sm:$0xff] }
  0xf2   :  { %v1646_v60 = vpop.eup %1645  ;;  %v462_v48 = vmul.f32 %v1756_v7, %v1644_v20  ;;  %v632_v7 = vlaneseq }
  0xf3   :  { %v1648_v0 = vpop.eup %1647  ;;  %v464_v61 = vmul.f32 %v1646_v60, %v1914_v25  ;;  %v1760_v25 = vld [vmem:[%s2862_s0 + $0x30] sm:$0xff] }
  0xf4   :  { %v1650_v11 = vpop.eup %1649  ;;  %v466_v46 = vmul.f32 %v1758_v41, %v1648_v0  ;;  %v2454_v21 = vshrl.u32 %v632_v7, 7 }
  0xf5   :  { %v1652_v28 = vpop.eup %1651  ;;  %v468_v54 = vmul.f32 %v1650_v11, %v1928_v29  ;;  %v1762_v29 = vld [vmem:[%s2862_s0 + $0x78] sm:$0xff] }
  0xf6   :  { %v1654_v51 = vpop.eup %1653  ;;  %v452_v45 = vmul.f32 %v1760_v25, %v1652_v28 }
  0xf7   :  { %1451 = vmatmul.mubr.f32.vlgmr.msra.gmra.mrb[0].mxu0 %v442_v40  ;;  %1463 = vmatmul.mubr.f32.vlgmr.msra.gmra.mrb[0].mxu1 %v458_v27  ;;  %v1656_v5 = vpop.eup %1655  ;;  %v454_v58 = vmul.f32 %v1761_v35, %v1654_v51  ;;  %v2430_v40 = vpop.permute.xlu1 %760 }
  0xf8   :  { %1453 = vmatprep.mubr.f32.mxu0 %v444_v14  ;;  %1465 = vmatprep.mubr.f32.mxu1 %v460_v59  ;;  %v470_v62 = vmul.f32 %v1762_v29, %v1656_v5  ;;  %v2440_v59 = vpop.permute.xlu0 %757  ;;  %v634_v5 = vadd.s32 8, %v2454_v21 }
  0xfb   :  { %1454 = vmatmul.mubr.f32.gmra.mrb[2].mxu0 %v446_v16  ;;  %1466 = vmatmul.mubr.f32.gmra.mrb[2].mxu1 %v462_v48  ;;  %v2432_v27 = vpop.permute.xlu1 %763 }
  0xfc   :  { %1456 = vmatprep.mubr.f32.mxu0 %v448_v2  ;;  %1468 = vmatprep.mubr.f32.mxu1 %v464_v61  ;;  %v2444_v0 = vpop.permute.xlu0 %775 }
  0xff   :  { %1457 = vmatmul.mubr.f32.gmra.mrb[4].mxu0 %v450_v43  ;;  %1469 = vmatmul.mubr.f32.gmra.mrb[4].mxu1 %v466_v46  ;;  %v2434_v20 = vpop.permute.xlu1 %766 }
 0x100   :  { %1459 = vmatprep.mubr.f32.mxu0 %v452_v45  ;;  %1471 = vmatprep.mubr.f32.mxu1 %v468_v54  ;;  %v2448_v49 = vpop.permute.xlu0 %784  ;;  %v2464_v54 = vand.u32 127, %v632_v7 }
 0x102   :  { %vm670_vm15 = vcmp.ne.s32.totalorder %v634_v5, %v2464_v54  ;;  %vm669_vm4 = vcmp.ne.s32.totalorder %v2454_v21, %v2464_v54 }
 0x103   :  { %1460 = vmatmul.mubr.f32.gmra.mrb[6].mxu0 %v454_v58  ;;  %1472 = vmatmul.mubr.f32.gmra.mrb[6].mxu1 %v470_v62  ;;  %v2436_v13 = vpop.permute.xlu1 %769  ;;  %v641_v58 = vadd.s32 64, %v2454_v21 }
 0x104   :  { %v2452_v48 = vpop.permute.xlu0 %790 }
 0x105   :  { %vm677_vm0 = vcmp.ne.s32.totalorder %v641_v58, %v2464_v54 }
 0x107   :  { %v2438_v14 = vpop.permute.xlu1 %772 }
 0x10b   :  { %v2442_v60 = vpop.permute.xlu1 %778 }
 0x10f   :  { %v2446_v11 = vpop.permute.xlu1 %781 }
 0x113   :  { %v2450_v16 = vpop.permute.xlu1 %787 }
 0x1ca   :  { %v1452_v52 = vpop.f32.mrb[0].mxu0  ;;  %v1464_v55 = vpop.f32.mrb[0].mxu1 }
 0x1cb   :  { %v2376_v44 = vmul.f32 20.0, %v1452_v52  ;;  %v537_v47 = vpop.f32.mrb[1].mxu0  ;;  %v577_v18 = vpop.f32.mrb[1].mxu1  ;;  %v2382_v36 = vmul.f32 20.0, %v1464_v55  ;;  %v642_v52 = vadd.s32 72, %v2454_v21 }
 0x1cc   :  { %v2378_v3 = vmul.f32 20.0, %v537_v47  ;;  %v2384_v4 = vmul.f32 20.0, %v577_v18  ;;  %v2485_v18 = vld [vmem:[%s2865_s3] ss:$0 sm:$0xff] }
 0x1cd   :  { %874 = vmax.xlane.f32.xlu1 %v2376_v44  ;;  %vm678_vm2 = vcmp.ne.s32.totalorder %v642_v52, %v2464_v54 }
 0x1ce   :  { %v1467_v9 = vpop.f32.mrb[2].mxu1  ;;  %872 = vmax.xlane.f32.xlu0 %v2378_v3  ;;  %v1455_v8 = vpop.f32.mrb[2].mxu0 }
 0x1cf   :  { %v547_v1 = vpop.f32.mrb[3].mxu0  ;;  %v587_v19 = vpop.f32.mrb[3].mxu1  ;;  %v2388_v22 = vmul.f32 20.0, %v1455_v8  ;;  %v2394_v63 = vmul.f32 20.0, %v1467_v9 }
 0x1d0   :  { %v2390_v24 = vmul.f32 20.0, %v547_v1  ;;  %v2396_v50 = vmul.f32 20.0, %v587_v19 }
 0x1d1   :  { %890 = vmax.xlane.f32.xlu1 %v2382_v36 }
 0x1d2   :  { %v1470_v31 = vpop.f32.mrb[4].mxu1  ;;  %888 = vmax.xlane.f32.xlu0 %v2384_v4  ;;  %v1458_v6 = vpop.f32.mrb[4].mxu0 }
 0x1d3   :  { %v557_v30 = vpop.f32.mrb[5].mxu0  ;;  %v597_v39 = vpop.f32.mrb[5].mxu1  ;;  %v2400_v53 = vmul.f32 20.0, %v1458_v6  ;;  %v2406_v26 = vmul.f32 20.0, %v1470_v31  ;;  %v636_v6 = vadd.s32 24, %v2454_v21 }
 0x1d4   :  { %v2402_v23 = vmul.f32 20.0, %v557_v30  ;;  %v2408_v10 = vmul.f32 20.0, %v597_v39 }
 0x1d5   :  { %878 = vmax.xlane.f32.xlu1 %v2388_v22  ;;  %vm672_vm13 = vcmp.ne.s32.totalorder %v636_v6, %v2464_v54 }
 0x1d6   :  { %876 = vmax.xlane.f32.xlu0 %v2390_v24  ;;  %v1461_v42 = vpop.f32.mrb[6].mxu0  ;;  %v1473_v17 = vpop.f32.mrb[6].mxu1 }
 0x1d7   :  { %v567_v57 = vpop.f32.mrb[7].mxu0  ;;  %v607_v15 = vpop.f32.mrb[7].mxu1  ;;  %v2412_v32 = vmul.f32 20.0, %v1461_v42  ;;  %v2418_v33 = vmul.f32 20.0, %v1473_v17 }
 0x1d8   :  { %v2414_v56 = vmul.f32 20.0, %v567_v57  ;;  %v2420_v34 = vmul.f32 20.0, %v607_v15  ;;  %v643_v15 = vadd.s32 80, %v2454_v21 }
 0x1d9   :  { %894 = vmax.xlane.f32.xlu1 %v2394_v63 }
 0x1da   :  { %892 = vmax.xlane.f32.xlu0 %v2396_v50  ;;  %vm679_vm1 = vcmp.ne.s32.totalorder %v643_v15, %v2464_v54 }
 0x1dd   :  { %882 = vmax.xlane.f32.xlu1 %v2400_v53 }
 0x1de   :  { %880 = vmax.xlane.f32.xlu0 %v2402_v23 }
 0x1e1   :  { %898 = vmax.xlane.f32.xlu1 %v2406_v26 }
 0x1e2   :  { %896 = vmax.xlane.f32.xlu0 %v2408_v10 }
 0x1e5   :  { %886 = vmax.xlane.f32.xlu1 %v2412_v32 }
 0x1e6   :  { %884 = vmax.xlane.f32.xlu0 %v2414_v56 }
 0x1e9   :  { %902 = vmax.xlane.f32.xlu1 %v2418_v33 }
 0x1ea   :  { %900 = vmax.xlane.f32.xlu0 %v2420_v34 }
 0x1fa   :  { %793 = vperm.xlu1 %1528, %v751_v37  }
 0x200   :  { %796 = vperm.xlu0 %1527, %v752_v38  }
 0x25a   :  { %v875_v28 = vpop.xlane.xlu1 %874 }
 0x25b   :  { %v2457_v2 = vsub.f32 %v2376_v44, %v875_v28  ;;  %v873_v61 = vpop.xlane.xlu0 %872 }
 0x25c   :  { %v2461_v41 = vsub.f32 %v2378_v3, %v873_v61  ;;  %v1788_v3 = vmov 0.0  }
 0x25d   :  { %v922_v51 = vmul.f32 1.442695, %v2457_v2  ;;  %v1353_v9 = vsel %vm670_vm15, 1.0, %v1788_v3  ;;  %v1360_v31 = vsel %vm677_vm0, 1.0, %v1788_v3  ;;  %v1361_v42 = vsel %vm678_vm2, 1.0, %v1788_v3 }
 0x25e   :  { %v891_v46 = vpop.xlane.xlu1 %890  ;;  %v920_v45 = vmul.f32 1.442695, %v2461_v41  ;;  %v2512_v37 = vmul.f32 %v2485_v18, %v1360_v31  ;;  %v2519_v7 = vmul.f32 %v2485_v18, %v1361_v42  ;;  %v1355_v52 = vsel %vm672_vm13, 1.0, %v1788_v3 }
 0x25f   :  { %1657 = vpow2.f32 %v922_v51  ;;  %v2467_v12 = vsub.f32 %v2382_v36, %v891_v46  ;;  %v889_v43 = vpop.xlane.xlu0 %888  ;;  %v1352_v46 = vsel %vm669_vm4, 1.0, %v1788_v3 }
 0x260   :  { %v2470_v25 = vsub.f32 %v2384_v4, %v889_v43  ;;  %v2497_v4 = vmul.f32 %v2485_v18, %v1353_v9 }
 0x261   :  { %v938_v35 = vmul.f32 1.442695, %v2467_v12 }
 0x262   :  { %v936_v29 = vmul.f32 1.442695, %v2470_v25  ;;  %v879_v62 = vpop.xlane.xlu1 %878 }
 0x263   :  { %1659 = vpow2.f32 %v938_v35  ;;  %v2479_v55 = vsub.f32 %v2388_v22, %v879_v62  ;;  %v877_v44 = vpop.xlane.xlu0 %876  ;;  %v644_v35 = vadd.s32 88, %v2454_v21 }
 0x264   :  { %1661 = vpow2.f32 %v936_v29  ;;  %v2502_v30 = vsub.f32 %v2390_v24, %v877_v44  ;;  %v637_v24 = vadd.s32 32, %v2454_v21 }
 0x265   :  { %1663 = vpow2.f32 %v920_v45  ;;  %v926_v47 = vmul.f32 1.442695, %v2479_v55  ;;  %vm680_vm3 = vcmp.ne.s32.totalorder %v644_v35, %v2464_v54 }
 0x266   :  { %v895_v8 = vpop.xlane.xlu1 %894  ;;  %v924_v61 = vmul.f32 1.442695, %v2502_v30  ;;  %vm673_vm6 = vcmp.ne.s32.totalorder %v637_v24, %v2464_v54 }
 0x267   :  { %v2491_v36 = vsub.f32 %v2394_v63, %v895_v8  ;;  %v893_v1 = vpop.xlane.xlu0 %892  ;;  %1665 = vpow2.f32 %v926_v47  ;;  %v2538_v47 = vmul.f32 %v2485_v18, %v1352_v46  ;;  %v1356_v42 = vsel %vm673_vm6, 1.0, %v1788_v3 }
 0x268   :  { %v2494_v19 = vsub.f32 %v2396_v50, %v893_v1  ;;  %v1362_v1 = vsel %vm679_vm1, 1.0, %v1788_v3 }
 0x269   :  { %v1658_v22 = vpop.eup %1657  ;;  %v942_v39 = vmul.f32 1.442695, %v2491_v36  ;;  %v2562_v15 = vmul.f32 %v2485_v18, %v1362_v1  ;;  %v647_v1 = vadd.s32 112, %v2454_v21 }
 0x26a   :  { %v940_v17 = vmul.f32 1.442695, %v2494_v19  ;;  %v883_v63 = vpop.xlane.xlu1 %882  ;;  %v953_v57 = vmul.f32 %v1658_v22, %v2497_v4 }
 0x26b   :  { %v881_v50 = vpop.xlane.xlu0 %880  ;;  %v2524_v51 = vsub.f32 %v2400_v53, %v883_v63  ;;  %v635_v53 = vadd.s32 16, %v2454_v21  ;;  %vm683_vm11 = vcmp.ne.s32.totalorder %v647_v1, %v2464_v54 }
 0x26c   :  { %1667 = vpow2.f32 %v940_v17  ;;  %v2516_v38 = vsub.f32 %v2402_v23, %v881_v50  ;;  %970 = vadd.xlane.f32.xlu0 %v953_v57  ;;  %v638_v17 = vadd.s32 40, %v2454_v21  ;;  %v2559_v57 = vmul.f32 %v2485_v18, %v1355_v52 }
 0x26d   :  { %v1660_v28 = vpop.eup %1659  ;;  %1669 = vpow2.f32 %v942_v39  ;;  %v930_v9 = vmul.f32 1.442695, %v2524_v51  ;;  %vm671_vm5 = vcmp.ne.s32.totalorder %v635_v53, %v2464_v54  ;;  %v646_v52 = vadd.s32 104, %v2454_v21 }
 0x26e   :  { %v1662_v5 = vpop.eup %1661  ;;  %v928_v43 = vmul.f32 1.442695, %v2516_v38  ;;  %v899_v23 = vpop.xlane.xlu1 %898  ;;  %v961_v45 = vmul.f32 %v1660_v28, %v2519_v7  ;;  %v1363_v28 = vsel %vm680_vm3, 1.0, %v1788_v3  ;;  %vm674_vm7 = vcmp.ne.s32.totalorder %v638_v17, %v2464_v54 }
 0x26f   :  { %v1664_v58 = vpop.eup %1663  ;;  %v897_v29 = vpop.xlane.xlu0 %896  ;;  %v960_v62 = vmul.f32 %v1662_v5, %v2512_v37  ;;  %v2543_v8 = vsub.f32 %v2406_v26, %v899_v23  ;;  %v645_v26 = vadd.s32 96, %v2454_v21  ;;  %v1354_v23 = vsel %vm671_vm5, 1.0, %v1788_v3 }
 0x270   :  { %1671 = vpow2.f32 %v928_v43  ;;  %v2535_v44 = vsub.f32 %v2408_v10, %v897_v29  ;;  %986 = vadd.xlane.f32.xlu1 %v961_v45  ;;  %v952_v6 = vmul.f32 %v1664_v58, %v2538_v47  ;;  %v2572_v43 = vmul.f32 %v2485_v18, %v1356_v42 }
 0x271   :  { %1673 = vpow2.f32 %v924_v61  ;;  %984 = vadd.xlane.f32.xlu0 %v960_v62  ;;  %v1666_v22 = vpop.eup %1665  ;;  %v946_v50 = vmul.f32 1.442695, %v2543_v8  ;;  %vm681_vm9 = vcmp.ne.s32.totalorder %v645_v26, %v2464_v54  ;;  %v639_v58 = vadd.s32 48, %v2454_v21 }
 0x272   :  { %v944_v10 = vmul.f32 1.442695, %v2535_v44  ;;  %v887_v31 = vpop.xlane.xlu1 %886  ;;  %v955_v5 = vmul.f32 %v1666_v22, %v2559_v57  ;;  %v2585_v62 = vmul.f32 %v2485_v18, %v1363_v28  ;;  %vm682_vm10 = vcmp.ne.s32.totalorder %v646_v52, %v2464_v54 }
 0x273   :  { %v885_v39 = vpop.xlane.xlu0 %884  ;;  %v2566_v24 = vsub.f32 %v2412_v32, %v887_v31  ;;  %vm675_vm8 = vcmp.ne.s32.totalorder %v639_v58, %v2464_v54  ;;  %v1357_v42 = vsel %vm674_vm7, 1.0, %v1788_v3 }
 0x274   :  { %1675 = vpow2.f32 %v944_v10  ;;  %v2556_v63 = vsub.f32 %v2414_v56, %v885_v39  ;;  %968 = vadd.xlane.f32.xlu1 %v952_v6  ;;  %v1364_v6 = vsel %vm681_vm9, 1.0, %v1788_v3 }
 0x275   :  { %1677 = vpow2.f32 %v930_v9  ;;  %v934_v53 = vmul.f32 1.442695, %v2566_v24  ;;  %v2607_v26 = vmul.f32 %v2485_v18, %v1364_v6 }
 0x276   :  { %v1668_v61 = vpop.eup %1667  ;;  %v932_v46 = vmul.f32 1.442695, %v2556_v63  ;;  %v903_v56 = vpop.xlane.xlu1 %902 }
 0x277   :  { %v1670_v45 = vpop.eup %1669  ;;  %v901_v35 = vpop.xlane.xlu0 %900  ;;  %v962_v32 = vmul.f32 %v1668_v61, %v2562_v15  ;;  %v2590_v9 = vsub.f32 %v2418_v33, %v903_v56  ;;  %v725_v33 = vmul.f32 %v2485_v18, %v1354_v23  ;;  %v640_v56 = vadd.s32 56, %v2454_v21 }
 0x278   :  { %1679 = vpow2.f32 %v932_v46  ;;  %v2582_v29 = vsub.f32 %v2420_v34, %v901_v35  ;;  %974 = vadd.xlane.f32.xlu1 %v955_v5  ;;  %v963_v34 = vmul.f32 %v1670_v45, %v2585_v62  ;;  %v1358_v46 = vsel %vm675_vm8, 1.0, %v1788_v3 }
 0x279   :  { %1681 = vpow2.f32 %v946_v50  ;;  %988 = vadd.xlane.f32.xlu0 %v962_v32  ;;  %v950_v50 = vmul.f32 1.442695, %v2590_v9  ;;  %v1365_v23 = vsel %vm682_vm10, 1.0, %v1788_v3  ;;  %v2615_v45 = vmul.f32 %v2485_v18, %v1357_v42 }
 0x27a   :  { %v1672_v10 = vpop.eup %1671  ;;  %v948_v31 = vmul.f32 1.442695, %v2582_v29  ;;  %v1366_v35 = vsel %vm683_vm11, 1.0, %v1788_v3  ;;  %v648_v32 = vadd.s32 120, %v2454_v21  ;;  %v729_v58 = vmul.f32 %v2485_v18, %v1358_v46 }
 0x27b   :  { %v1674_v22 = vpop.eup %1673  ;;  %v956_v39 = vmul.f32 %v1672_v10, %v2572_v43  ;;  %vm676_vm12 = vcmp.ne.s32.totalorder %v640_v56, %v2464_v54 }
 0x27c   :  { %1683 = vpow2.f32 %v948_v31  ;;  %990 = vadd.xlane.f32.xlu1 %v963_v34  ;;  %v954_v61 = vmul.f32 %v1674_v22, %v725_v33  ;;  %v2626_v34 = vmul.f32 %v2485_v18, %v1366_v35  ;;  %vm684_vm14 = vcmp.ne.s32.totalorder %v648_v32, %v2464_v54 }
 0x27d   :  { %1685 = vpow2.f32 %v934_v53  ;;  %976 = vadd.xlane.f32.xlu0 %v956_v39  ;;  %v2621_v53 = vmul.f32 %v2485_v18, %v1365_v23  ;;  %v1359_v21 = vsel %vm676_vm12, 1.0, %v1788_v3  ;;  %v753_v23 = vld [vmem:[%s2863_s1 + $0x70] sm:$0xff] }
 0x27e   :  { %v1676_v28 = vpop.eup %1675  ;;  %1687 = vpow2.f32 %v950_v50  ;;  %v1367_v50 = vsel %vm684_vm14, 1.0, %v1788_v3 }
 0x27f   :  { %v1678_v5 = vpop.eup %1677  ;;  %v964_v17 = vmul.f32 %v1676_v28, %v2607_v26  ;;  %v730_v28 = vmul.f32 %v2485_v18, %v1359_v21  ;;  %v2635_v46 = vmul.f32 %v2485_v18, %v1367_v50  ;;  %v2647_v18 = vld [vmem:[%s2864_s2] ss:$0 sm:$0xff] }
 0x280   :  { %972 = vadd.xlane.f32.xlu1 %v954_v61  ;;  %v957_v1 = vmul.f32 %v1678_v5, %v2615_v45  ;;  %v754_v5 = vld [vmem:[%s2863_s1 + $0x78] sm:$0xff]  ;;  %vm809_vm15 = vcmp.eq.s32.totalorder %v2430_v40, %v2647_v18  ;;  %vm810_vm0 = vcmp.eq.s32.totalorder %v2432_v27, %v2647_v18  ;;  %vm808_vm2 = vcmp.eq.s32.totalorder %v2440_v59, %v2647_v18 }
 0x281   :  { %992 = vadd.xlane.f32.xlu0 %v964_v17  ;;  %v1371_v17 = vsel %vm809_vm15, 1.0, %v1788_v3  ;;  %v1372_v32 = vsel %vm810_vm0, 1.0, %v1788_v3  ;;  %vm812_vm4 = vcmp.eq.s32.totalorder %v2436_v13, %v2647_v18  ;;  %v1370_v40 = vsel %vm808_vm2, 1.0, %v1788_v3 }
 0x282   :  { %v1680_v52 = vpop.eup %1679  ;;  %v2655_v35 = vmul.f32 %v1371_v17, %v2497_v4  ;;  %vm811_vm13 = vcmp.eq.s32.totalorder %v2434_v20, %v2647_v18  ;;  %v1374_v27 = vsel %vm812_vm4, 1.0, %v1788_v3  ;;  %vm814_vm1 = vcmp.eq.s32.totalorder %v2444_v0, %v2647_v18 }
 0x283   :  { %v1682_v10 = vpop.eup %1681  ;;  %v958_v31 = vmul.f32 %v1680_v52, %v729_v58  ;;  %v2664_v52 = vmul.f32 %v1372_v32, %v725_v33  ;;  %v2673_v59 = vmul.f32 %v1370_v40, %v2538_v47  ;;  %v1373_v13 = vsel %vm811_vm13, 1.0, %v1788_v3 }
 0x284   :  { %978 = vadd.xlane.f32.xlu1 %v957_v1  ;;  %v965_v22 = vmul.f32 %v1682_v10, %v2621_v53  ;;  %v2677_v4 = vmul.f32 %v1374_v27, %v2572_v43  ;;  %vm813_vm6 = vcmp.eq.s32.totalorder %v2438_v14, %v2647_v18  ;;  %v1376_v20 = vsel %vm814_vm1, 1.0, %v1788_v3 }
 0x285   :  { %980 = vadd.xlane.f32.xlu0 %v958_v31  ;;  %vm816_vm3 = vcmp.eq.s32.totalorder %v2446_v11, %v2647_v18  ;;  %v2687_v0 = vmul.f32 %v1373_v13, %v2559_v57  ;;  %v1375_v47 = vsel %vm813_vm6, 1.0, %v1788_v3  ;;  %v2690_v33 = vmul.f32 %v1376_v20, %v729_v58  ;;  %v794_v11 = vpop.permute.xlu1 %793 }
 0x286   :  { %v1684_v6 = vpop.eup %1683  ;;  %vm815_vm5 = vcmp.eq.s32.totalorder %v2442_v60, %v2647_v18  ;;  %v1378_v14 = vsel %vm816_vm3, 1.0, %v1788_v3  ;;  %vm818_vm9 = vcmp.eq.s32.totalorder %v2450_v16, %v2647_v18  ;;  %v2700_v57 = vmul.f32 %v1375_v47, %v2615_v45 }
 0x287   :  { %v1686_v39 = vpop.eup %1685  ;;  %v966_v42 = vmul.f32 %v1684_v6, %v2626_v34  ;;  %v1377_v43 = vsel %vm815_vm5, 1.0, %v1788_v3  ;;  %v2704_v58 = vmul.f32 %v1378_v14, %v2512_v37  ;;  %v1380_v60 = vsel %vm818_vm9, 1.0, %v1788_v3 }
 0x288   :  { %994 = vadd.xlane.f32.xlu1 %v965_v22  ;;  %v959_v61 = vmul.f32 %v1686_v39, %v730_v28  ;;  %v1688_v54 = vpop.eup %1687  ;;  %vm817_vm7 = vcmp.eq.s32.totalorder %v2448_v49, %v2647_v18  ;;  %vm820_vm8 = vcmp.eq.s32.totalorder %v794_v11, %v2647_v18  ;;  %v2712_v16 = vmul.f32 %v1377_v43, %v730_v28  ;;  %v797_v49 = vpop.permute.xlu0 %796 }
 0x289   :  { %996 = vadd.xlane.f32.xlu0 %v966_v42  ;;  %v967_v56 = vmul.f32 %v1688_v54, %v2635_v46  ;;  %v1379_v45 = vsel %vm817_vm7, 1.0, %v1788_v3  ;;  %v2716_v1 = vmul.f32 %v1380_v60, %v2562_v15  ;;  %vm819_vm10 = vcmp.eq.s32.totalorder %v2452_v48, %v2647_v18 }
 0x28a   :  { %v1382_v37 = vsel %vm820_vm8, 1.0, %v1788_v3  ;;  %v2724_v10 = vmul.f32 %v1379_v45, %v2519_v7  ;;  %v1381_v31 = vsel %vm819_vm10, 1.0, %v1788_v3  ;;  %vm821_vm11 = vcmp.eq.s32.totalorder %v797_v49, %v2647_v18 }
 0x28b   :  { %v2728_v21 = vmul.f32 %v1382_v37, %v2607_v26  ;;  %v2734_v48 = vmul.f32 %v1381_v31, %v2585_v62  ;;  %v1383_v15 = vsel %vm821_vm11, 1.0, %v1788_v3 }
 0x28c   :  { %982 = vadd.xlane.f32.xlu1 %v959_v61  ;;  %v2739_v7 = vmul.f32 %v1383_v15, %v2621_v53 }
 0x290   :  { %998 = vadd.xlane.f32.xlu1 %v967_v56 }
 0x29f   :  { %802 = vperm.xlu0 %1527, %v754_v5  }
 0x2a1   :  { %799 = vperm.xlu1 %1528, %v753_v23  }
 0x2be   :  { %1050 = vadd.xlane.f32.xlu0 %v2655_v35 }
 0x2c2   :  { %1052 = vadd.xlane.f32.xlu0 %v2664_v52 }
 0x2c5   :  { %1048 = vadd.xlane.f32.xlu1 %v2673_v59 }
 0x2c6   :  { %1056 = vadd.xlane.f32.xlu0 %v2677_v4 }
 0x2c9   :  { %1054 = vadd.xlane.f32.xlu1 %v2687_v0 }
 0x2ca   :  { %1060 = vadd.xlane.f32.xlu0 %v2690_v33 }
 0x2cd   :  { %1058 = vadd.xlane.f32.xlu1 %v2700_v57 }
 0x2ce   :  { %1064 = vadd.xlane.f32.xlu0 %v2704_v58 }
 0x2d1   :  { %1062 = vadd.xlane.f32.xlu1 %v2712_v16 }
 0x2d2   :  { %1068 = vadd.xlane.f32.xlu0 %v2716_v1 }
 0x2d5   :  { %1066 = vadd.xlane.f32.xlu1 %v2724_v10 }
 0x2d6   :  { %1072 = vadd.xlane.f32.xlu0 %v2728_v21 }
 0x2d9   :  { %1070 = vadd.xlane.f32.xlu1 %v2734_v48 }
 0x2dd   :  { %1074 = vadd.xlane.f32.xlu1 %v2739_v7 }
 0x2f9   :  { %v971_v26 = vpop.xlane.xlu0 %970 }
 0x2fa   :  { %1689 = vlog2.f32 %v971_v26 }
 0x2fd   :  { %v987_v6 = vpop.xlane.xlu1 %986 }
 0x2fe   :  { %v985_v39 = vpop.xlane.xlu0 %984 }
 0x301   :  { %v969_v22 = vpop.xlane.xlu1 %968 }
 0x302   :  { %1691 = vlog2.f32 %v969_v22 }
 0x303   :  { %1693 = vlog2.f32 %v987_v6 }
 0x304   :  { %1695 = vlog2.f32 %v985_v39  ;;  %v1690_v17 = vpop.eup %1689 }
 0x305   :  { %v975_v42 = vpop.xlane.xlu1 %974  ;;  %v1003_v27 = vmul.f32 0.6931472, %v1690_v17 }
 0x306   :  { %v989_v50 = vpop.xlane.xlu0 %988  ;;  %1697 = vlog2.f32 %v975_v42 }
 0x307   :  { %v1033_v60 = vsub.f32 %v2457_v2, %v1003_v27 }
 0x309   :  { %v991_v28 = vpop.xlane.xlu1 %990  ;;  %v1113_v42 = vmul.f32 %v1033_v60, %v2655_v35 }
 0x30a   :  { %v977_v61 = vpop.xlane.xlu0 %976 }
 0x30c   :  { %v1692_v40 = vpop.eup %1691 }
 0x30d   :  { %v973_v54 = vpop.xlane.xlu1 %972  ;;  %v1694_v20 = vpop.eup %1693  ;;  %v1001_v14 = vmul.f32 0.6931472, %v1692_v40 }
 0x30e   :  { %v993_v62 = vpop.xlane.xlu0 %992  ;;  %1699 = vlog2.f32 %v973_v54  ;;  %v1696_v43 = vpop.eup %1695  ;;  %v1019_v45 = vmul.f32 0.6931472, %v1694_v20 }
 0x30f   :  { %1701 = vlog2.f32 %v991_v28  ;;  %v1017_v26 = vmul.f32 0.6931472, %v1696_v43  ;;  %v1032_v2 = vsub.f32 %v2461_v41, %v1001_v14 }
 0x310   :  { %1703 = vlog2.f32 %v989_v50  ;;  %v1698_v31 = vpop.eup %1697 }
 0x311   :  { %v979_v56 = vpop.xlane.xlu1 %978  ;;  %v1007_v39 = vmul.f32 0.6931472, %v1698_v31 }
 0x312   :  { %v981_v5 = vpop.xlane.xlu0 %980  ;;  %1705 = vlog2.f32 %v979_v56 }
 0x313   :  { %1707 = vlog2.f32 %v977_v61  ;;  %v1035_v41 = vsub.f32 %v2479_v55, %v1007_v39 }
 0x315   :  { %v995_v23 = vpop.xlane.xlu1 %994 }
 0x316   :  { %v997_v32 = vpop.xlane.xlu0 %996  ;;  %1709 = vlog2.f32 %v995_v23 }
 0x317   :  { %1711 = vlog2.f32 %v993_v62 }
 0x318   :  { %v1700_v22 = vpop.eup %1699 }
 0x319   :  { %v983_v53 = vpop.xlane.xlu1 %982  ;;  %v1702_v50 = vpop.eup %1701 }
 0x31a   :  { %1713 = vlog2.f32 %v983_v53  ;;  %v1704_v28 = vpop.eup %1703  ;;  %v1023_v61 = vmul.f32 0.6931472, %v1702_v50  ;;  %v1115_v53 = vmul.f32 %v1035_v41, %v2687_v0 }
 0x31b   :  { %1715 = vlog2.f32 %v981_v5  ;;  %v1021_v35 = vmul.f32 0.6931472, %v1704_v28 }
 0x31c   :  { %v1706_v54 = vpop.eup %1705 }
 0x31d   :  { %v999_v13 = vpop.xlane.xlu1 %998  ;;  %v1708_v23 = vpop.eup %1707  ;;  %v1042_v17 = vsub.f32 %v2494_v19, %v1021_v35 }
 0x31e   :  { %v803_v47 = vpop.permute.xlu0 %802  ;;  %1717 = vlog2.f32 %v999_v13 }
 0x31f   :  { %vm823_vm12 = vcmp.eq.s32.totalorder %v803_v47, %v2647_v18  ;;  %1719 = vlog2.f32 %v997_v32  ;;  %v1122_v32 = vmul.f32 %v1042_v17, %v2716_v1 }
 0x320   :  { %v1385_v11 = vsel %vm823_vm12, 1.0, %v1788_v3  ;;  %v1710_v55 = vpop.eup %1709 }
 0x321   :  { %v2746_v37 = vmul.f32 %v1385_v11, %v2635_v46  ;;  %v800_v49 = vpop.permute.xlu1 %799  ;;  %v1041_v46 = vsub.f32 %v2467_v12, %v1019_v45  ;;  %v1712_v40 = vpop.eup %1711  ;;  %v1027_v27 = vmul.f32 0.6931472, %v1710_v55 }
 0x322   :  { %vm822_vm14 = vcmp.eq.s32.totalorder %v800_v49, %v2647_v18  ;;  %v1112_v18 = vmul.f32 %v1032_v2, %v2673_v59  ;;  %v1043_v59 = vsub.f32 %v2491_v36, %v1023_v61  ;;  %v1025_v0 = vmul.f32 0.6931472, %v1712_v40  ;;  %v1217_v40 = vld [vmem:[%s2866_s4 + $0x48] sm:$0xff] }
 0x323   :  { %v1384_v15 = vsel %vm822_vm14, 1.0, %v1788_v3  ;;  %1078 = vadd.xlane.f32.xlu1 %v2746_v37  ;;  %v1005_v3 = vmul.f32 0.6931472, %v1700_v22  ;;  %v1121_v12 = vmul.f32 %v1041_v46, %v2724_v10  ;;  %v1009_v10 = vmul.f32 0.6931472, %v1708_v23 }
 0x324   :  { %v2752_v6 = vmul.f32 %v1384_v15, %v2626_v34  ;;  %v1040_v34 = vsub.f32 %v2470_v25, %v1017_v26  ;;  %v1011_v25 = vmul.f32 0.6931472, %v1706_v54  ;;  %v1714_v13 = vpop.eup %1713  ;;  %v1045_v47 = vsub.f32 %v2543_v8, %v1027_v27 }
 0x325   :  { %v1034_v56 = vsub.f32 %v2502_v30, %v1005_v3  ;;  %v1123_v30 = vmul.f32 %v1043_v59, %v2734_v48  ;;  %v1036_v36 = vsub.f32 %v2516_v38, %v1009_v10  ;;  %v1716_v20 = vpop.eup %1715 }
 0x326   :  { %1076 = vadd.xlane.f32.xlu0 %v2752_v6  ;;  %v1120_v62 = vmul.f32 %v1040_v34, %v2704_v58  ;;  %v1037_v58 = vsub.f32 %v2524_v51, %v1011_v25  ;;  %v1044_v51 = vsub.f32 %v2535_v44, %v1025_v0  ;;  %v1013_v48 = vmul.f32 0.6931472, %v1716_v20 }
 0x327   :  { %1130 = vadd.xlane.f32.xlu1 %v1113_v42  ;;  %v1114_v5 = vmul.f32 %v1034_v56, %v2664_v52  ;;  %v1015_v52 = vmul.f32 0.6931472, %v1714_v13  ;;  %v1116_v11 = vmul.f32 %v1036_v36, %v2677_v4  ;;  %v1125_v1 = vmul.f32 %v1045_v47, %v2739_v7 }
 0x328   :  { %v1117_v19 = vmul.f32 %v1037_v58, %v2700_v57  ;;  %v1718_v14 = vpop.eup %1717  ;;  %v1038_v8 = vsub.f32 %v2556_v63, %v1013_v48  ;;  %v1124_v57 = vmul.f32 %v1044_v51, %v2728_v21  ;;  %v1208_v51 = vld [vmem:[%s2866_s4] sm:$0xff] }
 0x329   :  { %v1720_v43 = vpop.eup %1719  ;;  %v1039_v38 = vsub.f32 %v2566_v24, %v1015_v52  ;;  %v1031_v60 = vmul.f32 0.6931472, %v1718_v14 }
 0x32a   :  { %1128 = vadd.xlane.f32.xlu0 %v1112_v18  ;;  %v1029_v45 = vmul.f32 0.6931472, %v1720_v43  ;;  %v1118_v24 = vmul.f32 %v1038_v8, %v2690_v33 }
 0x32b   :  { %1146 = vadd.xlane.f32.xlu1 %v1121_v12  ;;  %v1047_v49 = vsub.f32 %v2590_v9, %v1031_v60  ;;  %v1119_v44 = vmul.f32 %v1039_v38, %v2712_v16 }
 0x32c   :  { %v1046_v4 = vsub.f32 %v2582_v29, %v1029_v45 }
 0x32d   :  { %v1127_v31 = vmul.f32 %v1047_v49, %v2746_v37 }
 0x32e   :  { %1144 = vadd.xlane.f32.xlu0 %v1120_v62  ;;  %v1126_v7 = vmul.f32 %v1046_v4, %v2752_v6  ;;  %v1209_v62 = vld [vmem:[%s2866_s4 + $0x8] sm:$0xff]  ;;  %v1210_v4 = vld [vmem:[%s2866_s4 + $0x10] sm:$0xff] }
 0x32f   :  { %1134 = vadd.xlane.f32.xlu1 %v1115_v53 }
 0x332   :  { %1132 = vadd.xlane.f32.xlu0 %v1114_v5 }
 0x333   :  { %1150 = vadd.xlane.f32.xlu1 %v1123_v30 }
 0x336   :  { %1148 = vadd.xlane.f32.xlu0 %v1122_v32 }
 0x337   :  { %1138 = vadd.xlane.f32.xlu1 %v1117_v19  ;;  %v1216_v19 = vld [vmem:[%s2866_s4 + $0x40] sm:$0xff] }
 0x33a   :  { %1136 = vadd.xlane.f32.xlu0 %v1116_v11 }
 0x33b   :  { %1154 = vadd.xlane.f32.xlu1 %v1125_v1 }
 0x33e   :  { %1152 = vadd.xlane.f32.xlu0 %v1124_v57 }
 0x33f   :  { %1142 = vadd.xlane.f32.xlu1 %v1119_v44 }
 0x342   :  { %1140 = vadd.xlane.f32.xlu0 %v1118_v24 }
 0x343   :  { %1158 = vadd.xlane.f32.xlu1 %v1127_v31  ;;  %v1211_v31 = vld [vmem:[%s2866_s4 + $0x18] sm:$0xff] }
 0x346   :  { %1156 = vadd.xlane.f32.xlu0 %v1126_v7 }
 0x34b   :  { %v1051_v15 = vpop.xlane.xlu0 %1050 }
 0x34c   :  { %vm1081_vm15 = vcmp.eq.f32.partialorder %v1051_v15, 0.0 }
 0x34d   :  { %v1097_v37 = vsel %vm1081_vm15, 1.0, %v1051_v15 }
 0x34e   :  { %1721 = vrcp.f32 %v1097_v37 }
 0x34f   :  { %v1053_v26 = vpop.xlane.xlu0 %1052 }
 0x350   :  { %vm1082_vm1 = vcmp.eq.f32.partialorder %v1053_v26, 0.0 }
 0x351   :  { %v1098_v61 = vsel %vm1082_vm1, 1.0, %v1053_v26 }
 0x352   :  { %v1049_v63 = vpop.xlane.xlu1 %1048 }
 0x353   :  { %v1057_v2 = vpop.xlane.xlu0 %1056  ;;  %vm1080_vm2 = vcmp.eq.f32.partialorder %v1049_v63, 0.0 }
 0x354   :  { %v1096_v50 = vsel %vm1080_vm2, 1.0, %v1049_v63  ;;  %vm1084_vm9 = vcmp.eq.f32.partialorder %v1057_v2, 0.0 }
 0x355   :  { %v1100_v36 = vsel %vm1084_vm9, 1.0, %v1057_v2 }
 0x356   :  { %v1055_v21 = vpop.xlane.xlu1 %1054 }
 0x357   :  { %v2788_v22 = vpop.xlane.xlu0 %1060  ;;  %vm1083_vm13 = vcmp.eq.f32.partialorder %v1055_v21, 0.0 }
 0x358   :  { %v1099_v28 = vsel %vm1083_vm13, 1.0, %v1055_v21  ;;  %v1722_v35 = vpop.eup %1721  ;;  %vm1086_vm11 = vcmp.eq.f32.partialorder %v2788_v22, 0.0 }
 0x359   :  { %v1102_v26 = vsel %vm1086_vm11, 1.0, %v2788_v22  ;;  %v1219_v22 = vld [vmem:[%s2866_s4 + $0x58] sm:$0xff] }
 0x35a   :  { %v1059_v9 = vpop.xlane.xlu1 %1058 }
 0x35b   :  { %v1065_v46 = vpop.xlane.xlu0 %1064  ;;  %vm1085_vm5 = vcmp.eq.f32.partialorder %v1059_v9, 0.0 }
 0x35c   :  { %vm1088_vm4 = vcmp.eq.f32.partialorder %v1065_v46, 0.0  ;;  %v1101_v58 = vsel %vm1085_vm5, 1.0, %v1059_v9 }
 0x35d   :  { %v1104_v18 = vsel %vm1088_vm4, 1.0, %v1065_v46 }
 0x35e   :  { %v2786_v16 = vpop.xlane.xlu1 %1062 }
 0x35f   :  { %v1069_v39 = vpop.xlane.xlu0 %1068  ;;  %vm1087_vm10 = vcmp.eq.f32.partialorder %v2786_v16, 0.0 }
 0x360   :  { %vm1090_vm3 = vcmp.eq.f32.partialorder %v1069_v39, 0.0  ;;  %v1103_v63 = vsel %vm1087_vm10, 1.0, %v2786_v16  ;;  %v1218_v16 = vld [vmem:[%s2866_s4 + $0x50] sm:$0xff] }
 0x361   :  { %v1106_v25 = vsel %vm1090_vm3, 1.0, %v1069_v39 }
 0x362   :  { %v1067_v29 = vpop.xlane.xlu1 %1066 }
 0x363   :  { %vm1089_vm0 = vcmp.eq.f32.partialorder %v1067_v29, 0.0  ;;  %v1073_v3 = vpop.xlane.xlu0 %1072 }
 0x364   :  { %v1105_v42 = vsel %vm1089_vm0, 1.0, %v1067_v29  ;;  %vm1092_vm8 = vcmp.eq.f32.partialorder %v1073_v3, 0.0 }
 0x365   :  { %1723 = vrcp.f32 %v1105_v42  ;;  %v1108_v60 = vsel %vm1092_vm8, 1.0, %v1073_v3 }
 0x366   :  { %v1071_v33 = vpop.xlane.xlu1 %1070  ;;  %1725 = vrcp.f32 %v1096_v50 }
 0x367   :  { %1727 = vrcp.f32 %v1104_v18  ;;  %vm1091_vm6 = vcmp.eq.f32.partialorder %v1071_v33, 0.0 }
 0x368   :  { %1729 = vrcp.f32 %v1099_v28  ;;  %v1107_v56 = vsel %vm1091_vm6, 1.0, %v1071_v33 }
 0x369   :  { %1731 = vrcp.f32 %v1098_v61 }
 0x36a   :  { %v1075_v6 = vpop.xlane.xlu1 %1074  ;;  %1733 = vrcp.f32 %v1107_v56  ;;  %v1212_v56 = vld [vmem:[%s2866_s4 + $0x20] sm:$0xff] }
 0x36b   :  { %1735 = vrcp.f32 %v1106_v25  ;;  %vm1093_vm7 = vcmp.eq.f32.partialorder %v1075_v6, 0.0 }
 0x36c   :  { %1737 = vrcp.f32 %v1101_v58  ;;  %v1109_v11 = vsel %vm1093_vm7, 1.0, %v1075_v6  ;;  %v1220_v58 = vld [vmem:[%s2866_s4 + $0x60] sm:$0xff] }
 0x36d   :  { %1739 = vrcp.f32 %v1100_v36 }
 0x36e   :  { %1741 = vrcp.f32 %v1109_v11  ;;  %v1215_v11 = vld [vmem:[%s2866_s4 + $0x38] sm:$0xff] }
 0x36f   :  { %v1724_v17 = vpop.eup %1723  ;;  %1743 = vrcp.f32 %v1108_v60 }
 0x370   :  { %v1726_v13 = vpop.eup %1725  ;;  %1745 = vrcp.f32 %v1103_v63 }
 0x371   :  { %v1728_v20 = vpop.eup %1727  ;;  %1747 = vrcp.f32 %v1102_v26 }
 0x372   :  { %v1730_v38 = vpop.eup %1729 }
 0x373   :  { %v1732_v57 = vpop.eup %1731 }
 0x374   :  { %v1734_v21 = vpop.eup %1733 }
 0x375   :  { %v1736_v46 = vpop.eup %1735 }
 0x376   :  { %v1738_v3 = vpop.eup %1737 }
 0x3b0   :  { %v2790_v34 = vpop.xlane.xlu1 %1078 }
 0x3b1   :  { %vm1095_vm12 = vcmp.eq.f32.partialorder %v2790_v34, 0.0 }
 0x3b2   :  { %v1111_v42 = vsel %vm1095_vm12, 1.0, %v2790_v34  ;;  %v1213_v34 = vld [vmem:[%s2866_s4 + $0x28] sm:$0xff] }
 0x3b3   :  { %v2792_v41 = vpop.xlane.xlu0 %1076  ;;  %1749 = vrcp.f32 %v1111_v42 }
 0x3b4   :  { %v1131_v12 = vpop.xlane.xlu1 %1130  ;;  %vm1094_vm14 = vcmp.eq.f32.partialorder %v2792_v41, 0.0 }
 0x3b5   :  { %v1161_v54 = vsub.f32 0.0, %v1131_v12  ;;  %v1110_v18 = vsel %vm1094_vm14, 1.0, %v2792_v41 }
 0x3b6   :  { %1751 = vrcp.f32 %v1110_v18 }
 0x3b7   :  { %v1179_v23 = vmul.f32 %v1722_v35, %v1161_v54  ;;  %v1129_v59 = vpop.xlane.xlu0 %1128  ;;  %v1740_v54 = vpop.eup %1739 }
 0x3b8   :  { %v1147_v53 = vpop.xlane.xlu1 %1146  ;;  %v1160_v10 = vsub.f32 0.0, %v1129_v59  ;;  %v1742_v25 = vpop.eup %1741 }
 0x3b9   :  { %v1225_v55 = vmul.f32 %v1209_v62, %v1179_v23  ;;  %v1169_v5 = vsub.f32 0.0, %v1147_v53 }
 0x3ba   :  { %v1177_v47 = vmul.f32 %v1726_v13, %v1160_v10 }
 0x3bb   :  { %v1195_v27 = vmul.f32 %v1724_v17, %v1169_v5  ;;  %1247 = vperm.xlu1 %1528, %v1225_v55   ;;  %v1145_v30 = vpop.xlane.xlu0 %1144  ;;  %v1744_v5 = vpop.eup %1743 }
 0x3bc   :  { %v1168_v0 = vsub.f32 0.0, %v1145_v30  ;;  %v1135_v32 = vpop.xlane.xlu1 %1134  ;;  %v1224_v49 = vmul.f32 %v1208_v51, %v1177_v47  ;;  %v1221_v30 = vld [vmem:[%s2866_s4 + $0x68] sm:$0xff]  ;;  %v1214_v51 = vld [vmem:[%s2866_s4 + $0x30] sm:$0xff] }
 0x3bd   :  { %v1233_v52 = vmul.f32 %v1217_v40, %v1195_v27  ;;  %v1163_v14 = vsub.f32 0.0, %v1135_v32 }
 0x3be   :  { %v1193_v48 = vmul.f32 %v1728_v20, %v1168_v0  ;;  %v1746_v0 = vpop.eup %1745 }
 0x3bf   :  { %1287 = vperm.xlu0 %1527, %v1233_v52   ;;  %v1133_v43 = vpop.xlane.xlu0 %1132  ;;  %v1183_v44 = vmul.f32 %v1730_v38, %v1163_v14  ;;  %v1748_v52 = vpop.eup %1747 }
 0x3c0   :  { %v1232_v1 = vmul.f32 %v1216_v19, %v1193_v48  ;;  %v1162_v8 = vsub.f32 0.0, %v1133_v43  ;;  %v1151_v45 = vpop.xlane.xlu1 %1150  ;;  %v1750_v60 = vpop.eup %1749 }
 0x3c1   :  { %v1171_v24 = vsub.f32 0.0, %v1151_v45  ;;  %v1227_v33 = vmul.f32 %v1211_v31, %v1183_v44  ;;  %v1752_v45 = vpop.eup %1751  ;;  %v1222_v44 = vld [vmem:[%s2866_s4 + $0x70] sm:$0xff] }
 0x3c2   :  { %v1181_v7 = vmul.f32 %v1732_v57, %v1162_v8  ;;  %1282 = vperm.xlu1 %1528, %v1232_v1  }
 0x3c3   :  { %1242 = vperm.xlu0 %1527, %v1224_v49   ;;  %v1149_v15 = vpop.xlane.xlu0 %1148  ;;  %v1199_v37 = vmul.f32 %v1734_v21, %v1171_v24 }
 0x3c4   :  { %v1226_v9 = vmul.f32 %v1210_v4, %v1181_v7  ;;  %v1170_v2 = vsub.f32 0.0, %v1149_v15  ;;  %v1139_v29 = vpop.xlane.xlu1 %1138  ;;  %v1223_v4 = vld [vmem:[%s2866_s4 + $0x78] sm:$0xff]  ;;  %s1789_s4 = smov [#allocation2]  }
 0x3c5   :  { %v1165_v39 = vsub.f32 0.0, %v1139_v29  ;;  %v1235_v35 = vmul.f32 %v1219_v22, %v1199_v37  ;;  %s1341_s30 = sshll.u32 %s1789_s4, 4  ;;  %s1342_s30 = int_to_ptr.vmem [resolvable:$true] %s1341_s30 }
 0x3c6   :  { %v1197_v6 = vmul.f32 %v1736_v46, %v1170_v2  ;;  %1252 = vperm.xlu1 %1528, %v1226_v9   ;;  %s1763_s6 = scalar_lea.vmem %s1342_s30, 2048  ;;  %p1768_p1 = scmp.lt.s32.totalorder %s1342_s30, %s1342_s30 }
 0x3c7   :  { %1257 = vperm.xlu0 %1527, %v1227_v33   ;;  %v1137_v50 = vpop.xlane.xlu0 %1136  ;;  %v1187_v62 = vmul.f32 %v1738_v3, %v1165_v39  ;;  %p1764_p0 = scmp.ne.s32.totalorder %s1342_s30, %s1763_s6  ;;  %p1769_p2 = scmp.lt.s32.totalorder %s1763_s6, %s1763_s6 }
 0x3c8   :  { %v1234_v28 = vmul.f32 %v1218_v16, %v1197_v6  ;;  %v1164_v61 = vsub.f32 0.0, %v1137_v50  ;;  %v1155_v12 = vpop.xlane.xlu1 %1154 }
 0x3c9   :  { %v1173_v23 = vsub.f32 0.0, %v1155_v12  ;;  %v1229_v17 = vmul.f32 %v1213_v34, %v1187_v62  ;;  %p1770_p3 = por %p1769_p2, %p1768_p1 }
 0x3ca   :  { %v1185_v59 = vmul.f32 %v1740_v54, %v1164_v61  ;;  %1292 = vperm.xlu1 %1528, %v1234_v28  }
 0x3cb   :  { %1297 = vperm.xlu0 %1527, %v1235_v35   ;;  %v1153_v41 = vpop.xlane.xlu0 %1152  ;;  %v1203_v40 = vmul.f32 %v1742_v25, %v1173_v23  ;;  %p1771_p4 = pnand %p1770_p3, %p1764_p0 }
 0x3cc   :  { %v1228_v53 = vmul.f32 %v1212_v56, %v1185_v59  ;;  %v1172_v55 = vsub.f32 0.0, %v1153_v41  ;;  %v1143_v10 = vpop.xlane.xlu1 %1142 }
 0x3cd   :  { %v1167_v27 = vsub.f32 0.0, %v1143_v10  ;;  %v1237_v19 = vmul.f32 %v1221_v30, %v1203_v40 }
 0x3ce   :  { %v1201_v13 = vmul.f32 %v1744_v5, %v1172_v55  ;;  %1262 = vperm.xlu1 %1528, %v1228_v53  }
 0x3cf   :  { %1267 = vperm.xlu0 %1527, %v1229_v17   ;;  %v1141_v36 = vpop.xlane.xlu0 %1140  ;;  %v1191_v14 = vmul.f32 %v1746_v0, %v1167_v27 }
 0x3d0   :  { %v1236_v32 = vmul.f32 %v1220_v58, %v1201_v13  ;;  %v1166_v20 = vsub.f32 0.0, %v1141_v36  ;;  %v1159_v47 = vpop.xlane.xlu1 %1158 }
 0x3d1   :  { %v1175_v48 = vsub.f32 0.0, %v1159_v47  ;;  %v1231_v57 = vmul.f32 %v1215_v11, %v1191_v14 }
 0x3d2   :  { %v1189_v43 = vmul.f32 %v1748_v52, %v1166_v20  ;;  %1302 = vperm.xlu1 %1528, %v1236_v32  }
 0x3d3   :  { %1307 = vperm.xlu0 %1527, %v1237_v19   ;;  %v1157_v38 = vpop.xlane.xlu0 %1156  ;;  %v1207_v49 = vmul.f32 %v1750_v60, %v1175_v48 }
 0x3d4   :  { %v1230_v1 = vmul.f32 %v1214_v51, %v1189_v43  ;;  %v1174_v8 = vsub.f32 0.0, %v1157_v38 }
 0x3d5   :  { %v1239_v7 = vmul.f32 %v1223_v4, %v1207_v49 }
 0x3d6   :  { %v1205_v24 = vmul.f32 %v1752_v45, %v1174_v8  ;;  %1272 = vperm.xlu1 %1528, %v1230_v1  }
 0x3d7   :  { %1277 = vperm.xlu0 %1527, %v1231_v57  }
 0x3d8   :  { %v1238_v31 = vmul.f32 %v1222_v44, %v1205_v24 }
 0x3da   :  { %1312 = vperm.xlu1 %1528, %v1238_v31  }
 0x3db   :  { %1317 = vperm.xlu0 %1527, %v1239_v7  }
 0x43a   :  { %v1248_v63 = vpop.permute.xlu1 %1247 }
 0x43b   :  { %1321 = vst [vmem:[#allocation2 + $0x8] sm:$0xff] %v1248_v63 }
 0x43e   :  { %v1288_v15 = vpop.permute.xlu0 %1287 }
 0x43f   :  { %1329 = vst [vmem:[#allocation2 + $0x48] sm:$0xff] %v1288_v15 }
 0x441   :  { %v1283_v21 = vpop.permute.xlu1 %1282 }
 0x442   :  { %1328 = vst [vmem:[#allocation2 + $0x40] sm:$0xff] %v1283_v21  ;;  %v1243_v26 = vpop.permute.xlu0 %1242 }
 0x443   :  { %1320 = vst [vmem:[#allocation2] sm:$0xff] %v1243_v26 }
 0x445   :  { %v1253_v9 = vpop.permute.xlu1 %1252 }
 0x446   :  { %1322 = vst [vmem:[#allocation2 + $0x10] sm:$0xff] %v1253_v9  ;;  %v1258_v2 = vpop.permute.xlu0 %1257 }
 0x447   :  { %1323 = vst [vmem:[#allocation2 + $0x18] sm:$0xff] %v1258_v2 }
 0x449   :  { %v1293_v29 = vpop.permute.xlu1 %1292 }
 0x44a   :  { %1330 = vst [vmem:[#allocation2 + $0x50] sm:$0xff] %v1293_v29  ;;  %v1298_v46 = vpop.permute.xlu0 %1297 }
 0x44b   :  { %1331 = vst [vmem:[#allocation2 + $0x58] sm:$0xff] %v1298_v46 }
 0x44d   :  { %v1263_v33 = vpop.permute.xlu1 %1262 }
 0x44e   :  { %1324 = vst [vmem:[#allocation2 + $0x20] sm:$0xff] %v1263_v33  ;;  %v1268_v37 = vpop.permute.xlu0 %1267 }
 0x44f   :  { %1325 = vst [vmem:[#allocation2 + $0x28] sm:$0xff] %v1268_v37 }
 0x451   :  { %v1303_v16 = vpop.permute.xlu1 %1302 }
 0x452   :  { %1332 = vst [vmem:[#allocation2 + $0x60] sm:$0xff] %v1303_v16  ;;  %v1308_v39 = vpop.permute.xlu0 %1307 }
 0x453   :  { %1333 = vst [vmem:[#allocation2 + $0x68] sm:$0xff] %v1308_v39 }
 0x455   :  { %v1273_v22 = vpop.permute.xlu1 %1272 }
 0x456   :  { %1326 = vst [vmem:[#allocation2 + $0x30] sm:$0xff] %v1273_v22  ;;  %v1278_v6 = vpop.permute.xlu0 %1277 }
 0x457   :  { %1327 = vst [vmem:[#allocation2 + $0x38] sm:$0xff] %v1278_v6 }
 0x459   :  { %v1313_v42 = vpop.permute.xlu1 %1312 }
 0x45a   :  { %1334 = vst [vmem:[#allocation2 + $0x70] sm:$0xff] %v1313_v42  ;;  %v1318_v50 = vpop.permute.xlu0 %1317 }
 0x45b   :  { %1335 = vst [vmem:[#allocation2 + $0x78] sm:$0xff] %v1318_v50 }
 0x45c   :  { %1774 = shalt.err (!%p1771_p4)
}
 0x45d   :  { %s1775_s9 = scalar_lea.hbm %s2867_s5, 2048 }
 0x45e   :  { %p1776_p5 = scmp.ne.s32.totalorder %s2867_s5, %s1775_s9  ;;  %p1779_p6 = scmp.lt.u32.totalorder %s1775_s9, %s2867_s5 }
 0x460   :  { %p1781_p7 = pnand %p1779_p6, %p1776_p5 }
 0x462   :  { %1784 = shalt.err (!%p1781_p7)
}
 0x463   :  { %s1790_s14 = smov 128   ;;  %s1791_s15 = smov 8  }
 0x464   :  { %1347 = dma.vmem_to_hbm [thread:$0]  %s1342_s30, 2048, %s2867_s5, [#allocation3], %s1790_s14, %s1790_s14, %s1791_s15  }
 0x465   :  { %1785 = dma.done.wait [#allocation3], 2048  }
 0x466   :  { %1786 = vsyncadd [#allocation3], 4294965248 }
 0x467   :  { %1351 = vsyncpa [#allocation3], 1 }

</bundles_post_ra>
